<compile_context>
chip_gen: v6e
topology: v6e:2x2x1
jax: 0.10.0
libtpu: 0.0.40
codegen_flags: <defaults>
</compile_context>

<pallas_src>
import functools

import jax
import jax.numpy as jnp
from jax import lax
from jax.experimental import pallas as pl
from jax.experimental.pallas import tpu as pltpu


# ----------------------------------------------------------------------------
# Pallas kernels
# ----------------------------------------------------------------------------
def _encoder_kernel(x_ref, w1_ref, b1_ref, w2_ref, b2_ref, z_ref):
    """z = F.normalize(relu(x@W1+b1)@W2+b2, dim=1).  bf16 MXU, f32 accumulate."""
    h = jnp.dot(x_ref[...], w1_ref[...], preferred_element_type=jnp.float32)
    h = jnp.maximum(h + b1_ref[...], 0.0)
    z = jnp.dot(h.astype(jnp.bfloat16), w2_ref[...],
                preferred_element_type=jnp.float32) + b2_ref[...]
    ssq = jnp.sum(z * z, axis=-1, keepdims=True)
    # 1/max(||z||, 1e-12) == rsqrt(max(ssq, 1e-24)); rsqrt runs on the EUP slot.
    z_ref[...] = z * lax.rsqrt(jnp.maximum(ssq, 1e-24))


def _momentum_kernel(m, w1q, b1q, w2q, b2q, w1k, b1k, w2k, b2k, o1, o2, o3, o4):
    """param_k = param_k*m + param_q*(1-m), all four tensors in one launch."""
    o1[...] = w1k[...] * m + w1q[...] * (1.0 - m)
    o2[...] = b1k[...] * m + b1q[...] * (1.0 - m)
    o3[...] = w2k[...] * m + w2q[...] * (1.0 - m)
    o4[...] = b2k[...] * m + b2q[...] * (1.0 - m)


def _lneg_kernel(inv_t, zq_ref, q_ref, out_ref):
    """One K-tile of l_neg = (z_q @ queue_T.T) / T ; queue tile is (TK, C)."""
    out_ref[...] = lax.dot_general(
        zq_ref[...], q_ref[...].astype(jnp.bfloat16),
        dimension_numbers=(((1,), (1,)), ((), ())),
        preferred_element_type=jnp.float32) * inv_t


def _enqueue_lpos_kernel(inv_t, ptr_blk_ref, zq_ref, zk_ref, q_in_ref,
                         q_out_ref, lpos_ref):
    """In-place queue[ptr:ptr+n, :] = z_k  (aliased slab write) + fused l_pos."""
    del ptr_blk_ref, q_in_ref  # ptr only drives the BlockSpec index_map
    zk = zk_ref[...]
    q_out_ref[...] = zk
    lpos_ref[...] = jnp.sum(zq_ref[...] * zk, axis=-1, keepdims=True) * inv_t


# ----------------------------------------------------------------------------
# Pallas wrappers
# ----------------------------------------------------------------------------
def _fullspec(shape):
    nd = len(shape)
    return pl.BlockSpec(shape, lambda *idx, _nd=nd: (0,) * _nd)


def encoder_forward(x, w1, b1, w2, b2, *, block_n=None):
    n, in_dim = x.shape
    hid = w1.shape[1]
    c = w2.shape[1]
    if block_n is None:
        block_n = 128 if (n % 128 == 0) else n
    assert n % block_n == 0
    return pl.pallas_call(
        _encoder_kernel,
        grid=(n // block_n,),
        in_specs=[
            pl.BlockSpec((block_n, in_dim), lambda i: (i, 0)),
            pl.BlockSpec((in_dim, hid), lambda i: (0, 0)),
            pl.BlockSpec((1, hid), lambda i: (0, 0)),
            pl.BlockSpec((hid, c), lambda i: (0, 0)),
            pl.BlockSpec((1, c), lambda i: (0, 0)),
        ],
        out_specs=pl.BlockSpec((block_n, c), lambda i: (i, 0)),
        out_shape=jax.ShapeDtypeStruct((n, c), jnp.float32),
        compiler_params=pltpu.CompilerParams(dimension_semantics=("parallel",)),
    )(x, w1, b1, w2, b2)


def momentum_update(params_q, params_k, m):
    """Single fused launch; param_k inputs aliased to the outputs (in place)."""
    nq = len(params_q)
    return pl.pallas_call(
        functools.partial(_momentum_kernel, float(m)),
        grid=(1,),
        in_specs=[_fullspec(p.shape) for p in (*params_q, *params_k)],
        out_specs=tuple(_fullspec(p.shape) for p in params_k),
        out_shape=tuple(jax.ShapeDtypeStruct(p.shape, p.dtype) for p in params_k),
        input_output_aliases={nq + i: i for i in range(len(params_k))},
    )(*params_q, *params_k)


def lneg_forward(z_q_bf16, queue_t, temperature, *, block_k=None):
    """l_neg = z_q @ queue_t.T / T, tiled over K (queue_t is (K, C))."""
    n, c = z_q_bf16.shape
    big_k = queue_t.shape[0]
    if block_k is None:
        block_k = big_k
        for t in (4096, 2048, 1024, 512, 256, 128):   # keep queue tile <= 2 MiB f32
            if big_k % t == 0:
                block_k = t
                break
    assert big_k % block_k == 0
    return pl.pallas_call(
        functools.partial(_lneg_kernel, float(1.0 / temperature)),
        grid=(big_k // block_k,),
        in_specs=[
            pl.BlockSpec((n, c), lambda k: (0, 0)),          # z_q, resident
            pl.BlockSpec((block_k, c), lambda k: (k, 0)),    # queue tile
        ],
        out_specs=pl.BlockSpec((n, block_k), lambda k: (0, k)),  # lane-dense
        out_shape=jax.ShapeDtypeStruct((n, big_k), jnp.float32),
        compiler_params=pltpu.CompilerParams(dimension_semantics=("parallel",)),
    )(z_q_bf16, queue_t)


def enqueue_and_lpos(queue_t, z_q, z_k, ptr_block, temperature):
    """In-place queue_t[ptr:ptr+n, :] = z_k (aliased, dynamic ptr) + l_pos."""
    big_k, c = queue_t.shape
    n = z_k.shape[0]
    grid_spec = pltpu.PrefetchScalarGridSpec(
        num_scalar_prefetch=1,            # ptr_block lives in SMEM
        grid=(1,),
        in_specs=[
            pl.BlockSpec((n, c), lambda i, p: (0, 0)),       # z_q
            pl.BlockSpec((n, c), lambda i, p: (0, 0)),       # z_k
            pl.BlockSpec((n, c), lambda i, p: (p[0], 0)),    # queue slab (aliased)
        ],
        out_specs=(
            pl.BlockSpec((n, c), lambda i, p: (p[0], 0)),    # queue slab, in place
            pl.BlockSpec((n, 1), lambda i, p: (0, 0)),       # l_pos
        ),
    )
    return pl.pallas_call(
        functools.partial(_enqueue_lpos_kernel, float(1.0 / temperature)),
        grid_spec=grid_spec,
        out_shape=(jax.ShapeDtypeStruct((big_k, c), queue_t.dtype),
                   jax.ShapeDtypeStruct((n, 1), jnp.float32)),
        input_output_aliases={3: 0},      # operand 3 (queue, after ptr/z_q/z_k) -> out 0
        compiler_params=pltpu.CompilerParams(dimension_semantics=("arbitrary",)),
    )(ptr_block, z_q, z_k, queue_t)


# ----------------------------------------------------------------------------
# One fused MoCo step (jitted; params_k and queue buffers are donated so the
# in-kernel aliasing is a true in-place update with no HBM copies).
# ----------------------------------------------------------------------------
def _moco_step(params_q, params_k, queue_t, ptr, data_q, data_k, *, m, T, block_k):
    n = data_q.shape[0]
    big_k = queue_t.shape[0]
    w1q, b1q, w2q, b2q = params_q

    # ---- query branch ----
    z_q = encoder_forward(data_q.astype(jnp.bfloat16),
                          w1q.astype(jnp.bfloat16), b1q,
                          w2q.astype(jnp.bfloat16), b2q)

    # ---- momentum update of key encoder (fused, in place) ----
    params_k = momentum_update(params_q, params_k, m)
    w1k, b1k, w2k, b2k = params_k

    # ---- key branch ----
    # Batch shuffle/unshuffle dropped: world_size==1 and no BatchNorm in the
    # encoder, so shuffle followed by its inverse is mathematically an identity.
    z_k = encoder_forward(data_k.astype(jnp.bfloat16),
                          w1k.astype(jnp.bfloat16), b1k,
                          w2k.astype(jnp.bfloat16), b2k)

    # ---- logits: l_neg tiled over K; l_pos fused into the enqueue kernel ----
    l_neg = lneg_forward(z_q.astype(jnp.bfloat16), queue_t, T, block_k=block_k)

    # ---- dequeue/enqueue (ptr stays on device; no wraparound since K % n == 0) ----
    ptr_block = ptr // n                       # row-slab block index, (1,) int32
    new_queue, l_pos = enqueue_and_lpos(queue_t, z_q, z_k, ptr_block, T)

    logits = jnp.concatenate([l_pos, l_neg], axis=1)   # lane-dense pieces, one XLA concat
    # TODO(synk): torch.long is int64; JAX x64 is off, so labels use int32.
    labels = jnp.zeros((n,), dtype=jnp.int32)
    new_ptr = (ptr + n) % big_k
    return logits, labels, params_k, new_queue, new_ptr


# ----------------------------------------------------------------------------
# MoCo module (JAX/Pallas)
# ----------------------------------------------------------------------------
class MoCoPallas:
    def __init__(self, moco_K, moco_m, moco_T, queue_dim, in_dim, hidden_dim, key,
                 logits_block_k=None):
        self.K = int(moco_K)
        self.m = float(moco_m)
        self.T = float(moco_T)
        self._block_k = logits_block_k

        k1, k2, k3 = jax.random.split(key, 3)
        w1 = jax.random.normal(k1, (in_dim, hidden_dim), jnp.float32) / jnp.sqrt(float(in_dim))
        b1 = jnp.zeros((1, hidden_dim), jnp.float32)
        w2 = jax.random.normal(k2, (hidden_dim, queue_dim), jnp.float32) / jnp.sqrt(float(hidden_dim))
        b2 = jnp.zeros((1, queue_dim), jnp.float32)
        self.params_q = (w1, b1, w2, b2)
        # key encoder initialized as an independent copy (its buffers are donated
        # every step, so they must not alias params_q).
        self.params_k = tuple(jnp.copy(p) for p in self.params_q)

        # Queue stored transposed, shape (K, queue_dim): each row is one key,
        # L2-normalized — equivalent to F.normalize(randn(queue_dim, K), dim=0).
        q0 = jax.random.normal(k3, (self.K, queue_dim), jnp.float32)
        q0 = q0 * lax.rsqrt(jnp.maximum(jnp.sum(q0 * q0, axis=1, keepdims=True), 1e-24))
        self.queue = q0
        self.queue_ptr = jnp.zeros((1,), jnp.int32)   # device-resident, no host sync

        self._step = jax.jit(_moco_step, donate_argnums=(1, 2),
                             static_argnames=("m", "T", "block_k"))

    def forward(self, data_q, data_k):
        n = data_q.shape[0]
        assert self.K % n == 0
        logits, labels, self.params_k, self.queue, self.queue_ptr = self._step(
            self.params_q, self.params_k, self.queue, self.queue_ptr,
            data_q, data_k, m=self.m, T=self.T, block_k=self._block_k)
        return logits, labels


# ----------------------------------------------------------------------------
if __name__ == "__main__":
    key = jax.random.PRNGKey(0)
    k_params, k_q, k_k = jax.random.split(key, 3)

    # Small but MXU/lane-aligned demo shapes (feature dims multiples of 128).
    N, IN_DIM, HIDDEN, C, K = 16, 128, 256, 128, 512   # K % N == 0

    moco = MoCoPallas(moco_K=K, moco_m=0.999, moco_T=0.07,
                      queue_dim=C, in_dim=IN_DIM, hidden_dim=HIDDEN,
                      key=k_params, logits_block_k=128)   # grid=(4,) over K

    data_q = jax.random.normal(k_q, (N, IN_DIM), jnp.float32)
    data_k = jax.random.normal(k_k, (N, IN_DIM), jnp.float32)

    logits, labels = moco.forward(data_q, data_k)
    jax.block_until_ready((logits, labels, moco.queue, moco.queue_ptr, moco.params_k))

    assert logits.shape == (N, 1 + K) and labels.shape == (N,)
    assert moco.queue.shape == (K, C)                 # transposed storage (rows = keys)
    assert int(moco.queue_ptr[0]) == N % K
    print("KERNEL_OK")
</pallas_src>

<mosaic_0001>
module attributes {stable_mosaic.version = 11 : i64} {
  func.func @_momentum_kernel(%arg0: i32, %arg1: memref<128x256xf32, #tpu.memory_space<vmem>>, %arg2: memref<1x256xf32, #tpu.memory_space<vmem>>, %arg3: memref<256x128xf32, #tpu.memory_space<vmem>>, %arg4: memref<1x128xf32, #tpu.memory_space<vmem>>, %arg5: memref<128x256xf32, #tpu.memory_space<vmem>>, %arg6: memref<1x256xf32, #tpu.memory_space<vmem>>, %arg7: memref<256x128xf32, #tpu.memory_space<vmem>>, %arg8: memref<1x128xf32, #tpu.memory_space<vmem>>, %arg9: memref<128x256xf32, #tpu.memory_space<vmem>>, %arg10: memref<1x256xf32, #tpu.memory_space<vmem>>, %arg11: memref<256x128xf32, #tpu.memory_space<vmem>>, %arg12: memref<1x128xf32, #tpu.memory_space<vmem>>) attributes {dimension_semantics = [#tpu.dimension_semantics<arbitrary>], iteration_bounds = array<i64: 1>, scalar_prefetch = 0 : i64, scratch_operands = 0 : i64, tpu.core_type = #tpu.core_type<tc>, window_params = [{pipeline_mode = #tpu.pipeline_mode<synchronous>, transform_indices = @transform_0, window_bounds = array<i64: 128, 256>}, {pipeline_mode = #tpu.pipeline_mode<synchronous>, transform_indices = @transform_1, window_bounds = array<i64: 1, 256>}, {pipeline_mode = #tpu.pipeline_mode<synchronous>, transform_indices = @transform_2, window_bounds = array<i64: 256, 128>}, {pipeline_mode = #tpu.pipeline_mode<synchronous>, transform_indices = @transform_3, window_bounds = array<i64: 1, 128>}, {pipeline_mode = #tpu.pipeline_mode<synchronous>, transform_indices = @transform_4, window_bounds = array<i64: 128, 256>}, {pipeline_mode = #tpu.pipeline_mode<synchronous>, transform_indices = @transform_5, window_bounds = array<i64: 1, 256>}, {pipeline_mode = #tpu.pipeline_mode<synchronous>, transform_indices = @transform_6, window_bounds = array<i64: 256, 128>}, {pipeline_mode = #tpu.pipeline_mode<synchronous>, transform_indices = @transform_7, window_bounds = array<i64: 1, 128>}, {pipeline_mode = #tpu.pipeline_mode<synchronous>, transform_indices = @transform_8, window_bounds = array<i64: 128, 256>}, {pipeline_mode = #tpu.pipeline_mode<synchronous>, transform_indices = @transform_9, window_bounds = array<i64: 1, 256>}, {pipeline_mode = #tpu.pipeline_mode<synchronous>, transform_indices = @transform_10, window_bounds = array<i64: 256, 128>}, {pipeline_mode = #tpu.pipeline_mode<synchronous>, transform_indices = @transform_11, window_bounds = array<i64: 1, 128>}]} {
    %c0 = arith.constant 0 : index
    %c0_0 = arith.constant 0 : index
    %0 = vector.load %arg5[%c0, %c0_0] : memref<128x256xf32, #tpu.memory_space<vmem>>, vector<128x256xf32>
    %cst = arith.constant 9.990000e-01 : f32
    %1 = vector.broadcast %cst : f32 to vector<128x256xf32>
    %2 = arith.mulf %0, %1 : vector<128x256xf32>
    %c0_1 = arith.constant 0 : index
    %c0_2 = arith.constant 0 : index
    %3 = vector.load %arg1[%c0_1, %c0_2] : memref<128x256xf32, #tpu.memory_space<vmem>>, vector<128x256xf32>
    %cst_3 = arith.constant 1.000000e-03 : f32
    %4 = vector.broadcast %cst_3 : f32 to vector<128x256xf32>
    %5 = arith.mulf %3, %4 : vector<128x256xf32>
    %6 = arith.addf %2, %5 : vector<128x256xf32>
    %c0_4 = arith.constant 0 : index
    %c0_5 = arith.constant 0 : index
    %7 = vector.load %arg9[%c0_4, %c0_5] : memref<128x256xf32, #tpu.memory_space<vmem>>, vector<128x256xf32>
    tpu.vector_store %arg9[%c0_4, %c0_5], %6 {strides = array<i32>} : memref<128x256xf32, #tpu.memory_space<vmem>>, vector<128x256xf32>,
    %c0_6 = arith.constant 0 : index
    %c0_7 = arith.constant 0 : index
    %8 = vector.load %arg6[%c0_6, %c0_7] : memref<1x256xf32, #tpu.memory_space<vmem>>, vector<1x256xf32>
    %cst_8 = arith.constant 9.990000e-01 : f32
    %9 = vector.broadcast %cst_8 : f32 to vector<1x256xf32>
    %10 = arith.mulf %8, %9 : vector<1x256xf32>
    %c0_9 = arith.constant 0 : index
    %c0_10 = arith.constant 0 : index
    %11 = vector.load %arg2[%c0_9, %c0_10] : memref<1x256xf32, #tpu.memory_space<vmem>>, vector<1x256xf32>
    %cst_11 = arith.constant 1.000000e-03 : f32
    %12 = vector.broadcast %cst_11 : f32 to vector<1x256xf32>
    %13 = arith.mulf %11, %12 : vector<1x256xf32>
    %14 = arith.addf %10, %13 : vector<1x256xf32>
    %c0_12 = arith.constant 0 : index
    %c0_13 = arith.constant 0 : index
    %15 = vector.load %arg10[%c0_12, %c0_13] : memref<1x256xf32, #tpu.memory_space<vmem>>, vector<1x256xf32>
    tpu.vector_store %arg10[%c0_12, %c0_13], %14 {strides = array<i32>} : memref<1x256xf32, #tpu.memory_space<vmem>>, vector<1x256xf32>,
    %c0_14 = arith.constant 0 : index
    %c0_15 = arith.constant 0 : index
    %16 = vector.load %arg7[%c0_14, %c0_15] : memref<256x128xf32, #tpu.memory_space<vmem>>, vector<256x128xf32>
    %cst_16 = arith.constant 9.990000e-01 : f32
    %17 = vector.broadcast %cst_16 : f32 to vector<256x128xf32>
    %18 = arith.mulf %16, %17 : vector<256x128xf32>
    %c0_17 = arith.constant 0 : index
    %c0_18 = arith.constant 0 : index
    %19 = vector.load %arg3[%c0_17, %c0_18] : memref<256x128xf32, #tpu.memory_space<vmem>>, vector<256x128xf32>
    %cst_19 = arith.constant 1.000000e-03 : f32
    %20 = vector.broadcast %cst_19 : f32 to vector<256x128xf32>
    %21 = arith.mulf %19, %20 : vector<256x128xf32>
    %22 = arith.addf %18, %21 : vector<256x128xf32>
    %c0_20 = arith.constant 0 : index
    %c0_21 = arith.constant 0 : index
    %23 = vector.load %arg11[%c0_20, %c0_21] : memref<256x128xf32, #tpu.memory_space<vmem>>, vector<256x128xf32>
    tpu.vector_store %arg11[%c0_20, %c0_21], %22 {strides = array<i32>} : memref<256x128xf32, #tpu.memory_space<vmem>>, vector<256x128xf32>,
    %c0_22 = arith.constant 0 : index
    %c0_23 = arith.constant 0 : index
    %24 = vector.load %arg8[%c0_22, %c0_23] : memref<1x128xf32, #tpu.memory_space<vmem>>, vector<1x128xf32>
    %cst_24 = arith.constant 9.990000e-01 : f32
    %25 = vector.broadcast %cst_24 : f32 to vector<1x128xf32>
    %26 = arith.mulf %24, %25 : vector<1x128xf32>
    %c0_25 = arith.constant 0 : index
    %c0_26 = arith.constant 0 : index
    %27 = vector.load %arg4[%c0_25, %c0_26] : memref<1x128xf32, #tpu.memory_space<vmem>>, vector<1x128xf32>
    %cst_27 = arith.constant 1.000000e-03 : f32
    %28 = vector.broadcast %cst_27 : f32 to vector<1x128xf32>
    %29 = arith.mulf %27, %28 : vector<1x128xf32>
    %30 = arith.addf %26, %29 : vector<1x128xf32>
    %c0_28 = arith.constant 0 : index
    %c0_29 = arith.constant 0 : index
    %31 = vector.load %arg12[%c0_28, %c0_29] : memref<1x128xf32, #tpu.memory_space<vmem>>, vector<1x128xf32>
    tpu.vector_store %arg12[%c0_28, %c0_29], %30 {strides = array<i32>} : memref<1x128xf32, #tpu.memory_space<vmem>>, vector<1x128xf32>,
    return
  }
  func.func @transform_0(%arg0: i32) -> (i32, i32) {
    %c0_i32 = arith.constant 0 : i32
    %c0_i32_0 = arith.constant 0 : i32
    %c0_i32_1 = arith.constant 0 : i32
    return %c0_i32, %c0_i32_0 : i32, i32
  }
  func.func @transform_1(%arg0: i32) -> (i32, i32) {
    %c0_i32 = arith.constant 0 : i32
    %c0_i32_0 = arith.constant 0 : i32
    %c0_i32_1 = arith.constant 0 : i32
    return %c0_i32, %c0_i32_0 : i32, i32
  }
  func.func @transform_2(%arg0: i32) -> (i32, i32) {
    %c0_i32 = arith.constant 0 : i32
    %c0_i32_0 = arith.constant 0 : i32
    %c0_i32_1 = arith.constant 0 : i32
    return %c0_i32, %c0_i32_0 : i32, i32
  }
  func.func @transform_3(%arg0: i32) -> (i32, i32) {
    %c0_i32 = arith.constant 0 : i32
    %c0_i32_0 = arith.constant 0 : i32
    %c0_i32_1 = arith.constant 0 : i32
    return %c0_i32, %c0_i32_0 : i32, i32
  }
  func.func @transform_4(%arg0: i32) -> (i32, i32) {
    %c0_i32 = arith.constant 0 : i32
    %c0_i32_0 = arith.constant 0 : i32
    %c0_i32_1 = arith.constant 0 : i32
    return %c0_i32, %c0_i32_0 : i32, i32
  }
  func.func @transform_5(%arg0: i32) -> (i32, i32) {
    %c0_i32 = arith.constant 0 : i32
    %c0_i32_0 = arith.constant 0 : i32
    %c0_i32_1 = arith.constant 0 : i32
    return %c0_i32, %c0_i32_0 : i32, i32
  }
  func.func @transform_6(%arg0: i32) -> (i32, i32) {
    %c0_i32 = arith.constant 0 : i32
    %c0_i32_0 = arith.constant 0 : i32
    %c0_i32_1 = arith.constant 0 : i32
    return %c0_i32, %c0_i32_0 : i32, i32
  }
  func.func @transform_7(%arg0: i32) -> (i32, i32) {
    %c0_i32 = arith.constant 0 : i32
    %c0_i32_0 = arith.constant 0 : i32
    %c0_i32_1 = arith.constant 0 : i32
    return %c0_i32, %c0_i32_0 : i32, i32
  }
  func.func @transform_8(%arg0: i32) -> (i32, i32) {
    %c0_i32 = arith.constant 0 : i32
    %c0_i32_0 = arith.constant 0 : i32
    %c0_i32_1 = arith.constant 0 : i32
    return %c0_i32, %c0_i32_0 : i32, i32
  }
  func.func @transform_9(%arg0: i32) -> (i32, i32) {
    %c0_i32 = arith.constant 0 : i32
    %c0_i32_0 = arith.constant 0 : i32
    %c0_i32_1 = arith.constant 0 : i32
    return %c0_i32, %c0_i32_0 : i32, i32
  }
  func.func @transform_10(%arg0: i32) -> (i32, i32) {
    %c0_i32 = arith.constant 0 : i32
    %c0_i32_0 = arith.constant 0 : i32
    %c0_i32_1 = arith.constant 0 : i32
    return %c0_i32, %c0_i32_0 : i32, i32
  }
  func.func @transform_11(%arg0: i32) -> (i32, i32) {
    %c0_i32 = arith.constant 0 : i32
    %c0_i32_0 = arith.constant 0 : i32
    %c0_i32_1 = arith.constant 0 : i32
    return %c0_i32, %c0_i32_0 : i32, i32
  }
}

module attributes {stable_mosaic.version = 11 : i64} {
  func.func @_encoder_kernel(%arg0: i32, %arg1: memref<16x128xbf16, #tpu.memory_space<vmem>>, %arg2: memref<128x256xbf16, #tpu.memory_space<vmem>>, %arg3: memref<1x256xf32, #tpu.memory_space<vmem>>, %arg4: memref<256x128xbf16, #tpu.memory_space<vmem>>, %arg5: memref<1x128xf32, #tpu.memory_space<vmem>>, %arg6: memref<16x128xf32, #tpu.memory_space<vmem>>) attributes {dimension_semantics = [#tpu.dimension_semantics<parallel>], iteration_bounds = array<i64: 1>, scalar_prefetch = 0 : i64, scratch_operands = 0 : i64, tpu.core_type = #tpu.core_type<tc>, window_params = [{transform_indices = @transform_0, window_bounds = array<i64: 16, 128>}, {pipeline_mode = #tpu.pipeline_mode<synchronous>, transform_indices = @transform_1, window_bounds = array<i64: 128, 256>}, {pipeline_mode = #tpu.pipeline_mode<synchronous>, transform_indices = @transform_2, window_bounds = array<i64: 1, 256>}, {pipeline_mode = #tpu.pipeline_mode<synchronous>, transform_indices = @transform_3, window_bounds = array<i64: 256, 128>}, {pipeline_mode = #tpu.pipeline_mode<synchronous>, transform_indices = @transform_4, window_bounds = array<i64: 1, 128>}, {transform_indices = @transform_5, window_bounds = array<i64: 16, 128>}]} {
    %c0 = arith.constant 0 : index
    %c0_0 = arith.constant 0 : index
    %0 = vector.load %arg1[%c0, %c0_0] : memref<16x128xbf16, #tpu.memory_space<vmem>>, vector<16x128xbf16>
    %c0_1 = arith.constant 0 : index
    %c0_2 = arith.constant 0 : index
    %1 = vector.load %arg2[%c0_1, %c0_2] : memref<128x256xbf16, #tpu.memory_space<vmem>>, vector<128x256xbf16>
    %cst = arith.constant dense<0.000000e+00> : vector<16x256xf32>
    %2 = tpu.matmul %0, %1, %cst {dimension_numbers = #tpu.dot_dimension_numbers<[1], [0], [0], [1], [0, 0, 1, 1], [], []>} : vector<16x128xbf16>, vector<128x256xbf16>, vector<16x256xf32> -> vector<16x256xf32>
    %c0_3 = arith.constant 0 : index
    %c0_4 = arith.constant 0 : index
    %3 = vector.load %arg3[%c0_3, %c0_4] : memref<1x256xf32, #tpu.memory_space<vmem>>, vector<1x256xf32>
    %4 = vector.broadcast %3 : vector<1x256xf32> to vector<16x256xf32>
    %5 = arith.addf %2, %4 : vector<16x256xf32>
    %cst_5 = arith.constant 0.000000e+00 : f32
    %6 = vector.broadcast %cst_5 : f32 to vector<16x256xf32>
    %7 = arith.maximumf %5, %6 : vector<16x256xf32>
    %8 = arith.truncf %7 : vector<16x256xf32> to vector<16x256xbf16>
    %c0_6 = arith.constant 0 : index
    %c0_7 = arith.constant 0 : index
    %9 = vector.load %arg4[%c0_6, %c0_7] : memref<256x128xbf16, #tpu.memory_space<vmem>>, vector<256x128xbf16>
    %cst_8 = arith.constant dense<0.000000e+00> : vector<16x128xf32>
    %10 = tpu.matmul %8, %9, %cst_8 {dimension_numbers = #tpu.dot_dimension_numbers<[1], [0], [0], [1], [0, 0, 1, 1], [], []>} : vector<16x256xbf16>, vector<256x128xbf16>, vector<16x128xf32> -> vector<16x128xf32>
    %c0_9 = arith.constant 0 : index
    %c0_10 = arith.constant 0 : index
    %11 = vector.load %arg5[%c0_9, %c0_10] : memref<1x128xf32, #tpu.memory_space<vmem>>, vector<1x128xf32>
    %12 = vector.broadcast %11 : vector<1x128xf32> to vector<16x128xf32>
    %13 = arith.addf %10, %12 : vector<16x128xf32>
    %14 = arith.mulf %13, %13 : vector<16x128xf32>
    %cst_11 = arith.constant dense<0.000000e+00> : vector<16xf32>
    %15 = vector.multi_reduction <add>, %14, %cst_11 [1] : vector<16x128xf32> to vector<16xf32>
    %16 = vector.shape_cast %15 : vector<16xf32> to vector<16x1xf32>
    %cst_12 = arith.constant 1.000000e-24 : f32
    %17 = vector.broadcast %cst_12 : f32 to vector<16x1xf32>
    %18 = arith.maximumf %16, %17 : vector<16x1xf32>
    %19 = math.rsqrt %18 : vector<16x1xf32>
    %20 = vector.broadcast %19 : vector<16x1xf32> to vector<16x128xf32>
    %21 = arith.mulf %13, %20 : vector<16x128xf32>
    %c0_13 = arith.constant 0 : index
    %c0_14 = arith.constant 0 : index
    %22 = vector.load %arg6[%c0_13, %c0_14] : memref<16x128xf32, #tpu.memory_space<vmem>>, vector<16x128xf32>
    tpu.vector_store %arg6[%c0_13, %c0_14], %21 {strides = array<i32>} : memref<16x128xf32, #tpu.memory_space<vmem>>, vector<16x128xf32>,
    return
  }
  func.func @transform_0(%arg0: i32) -> (i32, i32) {
    %c0_i32 = arith.constant 0 : i32
    %c0_i32_0 = arith.constant 0 : i32
    return %arg0, %c0_i32 : i32, i32
  }
  func.func @transform_1(%arg0: i32) -> (i32, i32) {
    %c0_i32 = arith.constant 0 : i32
    %c0_i32_0 = arith.constant 0 : i32
    %c0_i32_1 = arith.constant 0 : i32
    return %c0_i32, %c0_i32_0 : i32, i32
  }
  func.func @transform_2(%arg0: i32) -> (i32, i32) {
    %c0_i32 = arith.constant 0 : i32
    %c0_i32_0 = arith.constant 0 : i32
    %c0_i32_1 = arith.constant 0 : i32
    return %c0_i32, %c0_i32_0 : i32, i32
  }
  func.func @transform_3(%arg0: i32) -> (i32, i32) {
    %c0_i32 = arith.constant 0 : i32
    %c0_i32_0 = arith.constant 0 : i32
    %c0_i32_1 = arith.constant 0 : i32
    return %c0_i32, %c0_i32_0 : i32, i32
  }
  func.func @transform_4(%arg0: i32) -> (i32, i32) {
    %c0_i32 = arith.constant 0 : i32
    %c0_i32_0 = arith.constant 0 : i32
    %c0_i32_1 = arith.constant 0 : i32
    return %c0_i32, %c0_i32_0 : i32, i32
  }
  func.func @transform_5(%arg0: i32) -> (i32, i32) {
    %c0_i32 = arith.constant 0 : i32
    %c0_i32_0 = arith.constant 0 : i32
    return %arg0, %c0_i32 : i32, i32
  }
}

module attributes {stable_mosaic.version = 11 : i64} {
  func.func @_lneg_kernel(%arg0: i32, %arg1: memref<16x128xbf16, #tpu.memory_space<vmem>>, %arg2: memref<128x128xf32, #tpu.memory_space<vmem>>, %arg3: memref<16x128xf32, #tpu.memory_space<vmem>>) attributes {dimension_semantics = [#tpu.dimension_semantics<parallel>], iteration_bounds = array<i64: 4>, scalar_prefetch = 0 : i64, scratch_operands = 0 : i64, tpu.core_type = #tpu.core_type<tc>, window_params = [{pipeline_mode = #tpu.pipeline_mode<synchronous>, transform_indices = @transform_0, window_bounds = array<i64: 16, 128>}, {transform_indices = @transform_1, window_bounds = array<i64: 128, 128>}, {transform_indices = @transform_2, window_bounds = array<i64: 16, 128>}]} {
    %c0 = arith.constant 0 : index
    %c0_0 = arith.constant 0 : index
    %0 = vector.load %arg1[%c0, %c0_0] : memref<16x128xbf16, #tpu.memory_space<vmem>>, vector<16x128xbf16>
    %c0_1 = arith.constant 0 : index
    %c0_2 = arith.constant 0 : index
    %1 = vector.load %arg2[%c0_1, %c0_2] : memref<128x128xf32, #tpu.memory_space<vmem>>, vector<128x128xf32>
    %2 = arith.truncf %1 : vector<128x128xf32> to vector<128x128xbf16>
    %cst = arith.constant dense<0.000000e+00> : vector<16x128xf32>
    %3 = tpu.matmul %0, %2, %cst {dimension_numbers = #tpu.dot_dimension_numbers<[1], [1], [0], [0], [0, 0, 1, 0], [], []>} : vector<16x128xbf16>, vector<128x128xbf16>, vector<16x128xf32> -> vector<16x128xf32>
    %cst_3 = arith.constant 14.2857141 : f32
    %4 = vector.broadcast %cst_3 : f32 to vector<16x128xf32>
    %5 = arith.mulf %3, %4 : vector<16x128xf32>
    %c0_4 = arith.constant 0 : index
    %c0_5 = arith.constant 0 : index
    %6 = vector.load %arg3[%c0_4, %c0_5] : memref<16x128xf32, #tpu.memory_space<vmem>>, vector<16x128xf32>
    tpu.vector_store %arg3[%c0_4, %c0_5], %5 {strides = array<i32>} : memref<16x128xf32, #tpu.memory_space<vmem>>, vector<16x128xf32>,
    return
  }
  func.func @transform_0(%arg0: i32) -> (i32, i32) {
    %c0_i32 = arith.constant 0 : i32
    %c0_i32_0 = arith.constant 0 : i32
    %c0_i32_1 = arith.constant 0 : i32
    return %c0_i32, %c0_i32_0 : i32, i32
  }
  func.func @transform_1(%arg0: i32) -> (i32, i32) {
    %c0_i32 = arith.constant 0 : i32
    %c0_i32_0 = arith.constant 0 : i32
    return %arg0, %c0_i32 : i32, i32
  }
  func.func @transform_2(%arg0: i32) -> (i32, i32) {
    %c0_i32 = arith.constant 0 : i32
    %c0_i32_0 = arith.constant 0 : i32
    return %c0_i32, %arg0 : i32, i32
  }
}

module attributes {stable_mosaic.version = 11 : i64} {
  func.func @_enqueue_lpos_kernel(%arg0: i32, %arg1: memref<1xi32, #tpu.memory_space<smem>>, %arg2: memref<16x128xf32, #tpu.memory_space<vmem>>, %arg3: memref<16x128xf32, #tpu.memory_space<vmem>>, %arg4: memref<16x128xf32, #tpu.memory_space<vmem>>, %arg5: memref<16x128xf32, #tpu.memory_space<vmem>>, %arg6: memref<16x1xf32, #tpu.memory_space<vmem>>) attributes {dimension_semantics = [#tpu.dimension_semantics<arbitrary>], iteration_bounds = array<i64: 1>, scalar_prefetch = 1 : i64, scratch_operands = 0 : i64, tpu.core_type = #tpu.core_type<tc>, window_params = [{pipeline_mode = #tpu.pipeline_mode<synchronous>, transform_indices = @transform_0, window_bounds = array<i64: 16, 128>}, {pipeline_mode = #tpu.pipeline_mode<synchronous>, transform_indices = @transform_1, window_bounds = array<i64: 16, 128>}, {transform_indices = @transform_2, window_bounds = array<i64: 16, 128>}, {transform_indices = @transform_3, window_bounds = array<i64: 16, 128>}, {pipeline_mode = #tpu.pipeline_mode<synchronous>, transform_indices = @transform_4, window_bounds = array<i64: 16, 1>}]} {
    %c0 = arith.constant 0 : index
    %c0_0 = arith.constant 0 : index
    %0 = vector.load %arg3[%c0, %c0_0] : memref<16x128xf32, #tpu.memory_space<vmem>>, vector<16x128xf32>
    %c0_1 = arith.constant 0 : index
    %c0_2 = arith.constant 0 : index
    %1 = vector.load %arg5[%c0_1, %c0_2] : memref<16x128xf32, #tpu.memory_space<vmem>>, vector<16x128xf32>
    tpu.vector_store %arg5[%c0_1, %c0_2], %0 {strides = array<i32>} : memref<16x128xf32, #tpu.memory_space<vmem>>, vector<16x128xf32>,
    %c0_3 = arith.constant 0 : index
    %c0_4 = arith.constant 0 : index
    %2 = vector.load %arg2[%c0_3, %c0_4] : memref<16x128xf32, #tpu.memory_space<vmem>>, vector<16x128xf32>
    %3 = arith.mulf %2, %0 : vector<16x128xf32>
    %cst = arith.constant dense<0.000000e+00> : vector<16xf32>
    %4 = vector.multi_reduction <add>, %3, %cst [1] : vector<16x128xf32> to vector<16xf32>
    %5 = vector.shape_cast %4 : vector<16xf32> to vector<16x1xf32>
    %cst_5 = arith.constant 14.2857141 : f32
    %6 = vector.broadcast %cst_5 : f32 to vector<16x1xf32>
    %7 = arith.mulf %5, %6 : vector<16x1xf32>
    %c0_6 = arith.constant 0 : index
    %c0_7 = arith.constant 0 : index
    %8 = vector.load %arg6[%c0_6, %c0_7] : memref<16x1xf32, #tpu.memory_space<vmem>>, vector<16x1xf32>
    tpu.vector_store %arg6[%c0_6, %c0_7], %7 {strides = array<i32>} : memref<16x1xf32, #tpu.memory_space<vmem>>, vector<16x1xf32>,
    return
  }
  func.func @transform_0(%arg0: i32, %arg1: memref<1xi32, #tpu.memory_space<smem>>) -> (i32, i32) {
    %c0_i32 = arith.constant 0 : i32
    %c0_i32_0 = arith.constant 0 : i32
    %c0_i32_1 = arith.constant 0 : i32
    return %c0_i32, %c0_i32_0 : i32, i32
  }
  func.func @transform_1(%arg0: i32, %arg1: memref<1xi32, #tpu.memory_space<smem>>) -> (i32, i32) {
    %c0_i32 = arith.constant 0 : i32
    %c0_i32_0 = arith.constant 0 : i32
    %c0_i32_1 = arith.constant 0 : i32
    return %c0_i32, %c0_i32_0 : i32, i32
  }
  func.func @transform_2(%arg0: i32, %arg1: memref<1xi32, #tpu.memory_space<smem>>) -> (i32, i32) {
    %c0 = arith.constant 0 : index
    %0 = memref.load %arg1[%c0] : memref<1xi32, #tpu.memory_space<smem>>
    %c0_i32 = arith.constant 0 : i32
    %c0_i32_0 = arith.constant 0 : i32
    return %0, %c0_i32 : i32, i32
  }
  func.func @transform_3(%arg0: i32, %arg1: memref<1xi32, #tpu.memory_space<smem>>) -> (i32, i32) {
    %c0 = arith.constant 0 : index
    %0 = memref.load %arg1[%c0] : memref<1xi32, #tpu.memory_space<smem>>
    %c0_i32 = arith.constant 0 : i32
    %c0_i32_0 = arith.constant 0 : i32
    return %0, %c0_i32 : i32, i32
  }
  func.func @transform_4(%arg0: i32, %arg1: memref<1xi32, #tpu.memory_space<smem>>) -> (i32, i32) {
    %c0_i32 = arith.constant 0 : i32
    %c0_i32_0 = arith.constant 0 : i32
    %c0_i32_1 = arith.constant 0 : i32
    return %c0_i32, %c0_i32_0 : i32, i32
  }
}

</mosaic_0001>

<bundles_post_ra>
// kernel: _moco_step.8
= control target key start
LH: loop header
LB: loop body
LE: loop exit
PB: predicated region body
PF: predicated region fallthrough
CT: control target
= control target key end

     0   :  { %s424_s9 = smov 0   ;;  %s426_s10 = smov 0   ;;  %s495_s0 = inlined_call_operand.vmem [shape: bf16[16,128], index: 0, kind: input, shape index: {}]   ;;  %s496_s1 = inlined_call_operand.vmem [shape: f32[512,128], index: 1, kind: input, shape index: {}]   ;;  %s497_s2 = inlined_call_operand.vmem [shape: f32[16,512], index: 2, kind: output, shape index: {}]  }
   0x1   :  { %s428_s11 = smov 0  }
   0x2 LB: > { %s437_s12 = sadd.s32 4294967295, %s405_s11   ;;  %s439_s13 = sadd.s32 1, %s405_s11   ;;  %s405_s11 = sphi %s428_s11, %s501_s11   ;;  %s401_s10 = sphi %s426_s10, %s500_s10   ;;  %s397_s9 = sphi %s424_s9, %s499_s9  }
   0x3   : > { %s63_s14 = ssub.s32 %s405_s11, %s439_s13  ;;  %s66_s15 = sadd.s32 1, %s401_s10 }
   0x4   : > { %p64_p0 = scmp.eq.s32.totalorder %s63_s14, 0  ;;  %p76_p1 = scmp.ne.s32.totalorder %s401_s10, %s397_s9 }
   0x5   : > { %p77_p2 = scmp.eq.s32.totalorder %s437_s12, 3  ;;  %p318_p3 = scmp.ge.s32.totalorder %s405_s11, 1 }
   0x6   : > { %s447_s16 = scalar_select %p64_p0, %s401_s10, %s66_s15  }
   0x7   : > { %p449_p4 = por %p77_p2, %p76_p1  ;;  %p113_p5 = scmp.lt.s32.totalorder %s405_s11, 5 }
   0x9   : > { %p114_p6 = pnand %p318_p3, %p113_p5 }
   0xa   : > { %s320_s18 = sshll.u32 (!%p114_p6), %s437_s12, 4  ;;  %s131_s25 = sand.u32 (!%p114_p6), 1, %s397_s9  }
   0xb   : > { %117 = sbr.rel (%p114_p6) target bundleno = 293 (0x125), region = 28  ;;  %p135_p7 = scmp.lt.s32.totalorder (!%p114_p6), %s320_s18, 63 }
   0xc   : > { %s319_s26 = sshll.u32 (!%p114_p6), %s131_s25, 4 }
   0xd   : > { %s133_s27 = scalar_lea.vmem (!%p114_p6), [#allocation2], %s319_s26 }
  0x10   : > { %v407_v0 = vmov 0.0   ;;  %vm408_vm0 = vmmov 0   ;;  %s503_s18 = smov (!%p135_p7, %s320_s18), 63  ;;  %v382_v25 = vld [vmem:[%s495_s0] sm:$0xff]   ;;  %s324_s28 = sshll.u32 (%p449_p4), %s437_s12, 3 }
  0x11   : > { %336 = vmatprep.subr.bf16.mxu0 %v407_v0  ;;  %352 = vmatprep.mubr.msk.bf16.mxu0 %vm408_vm0, %v407_v0  ;;  %s321_s19 = sshll.u32 %s503_s18, 3  ;;  %s226_s3 = scalar_lea.vmem (%p449_p4), %s497_s2, %s324_s28 }
  0x12   : > { %s457_s22 = scalar_lea.vmem %s496_s1, %s321_s19 }
  0x13   : > { %v157_v1 = vld [vmem:[%s457_s22 + $0x70] sm:$0xff]  ;;  %v158_v2 = vld [vmem:[%s457_s22 + $0x78] sm:$0xff]  ;;  %v155_v4 = vld [vmem:[%s457_s22 + $0x60] sm:$0xff] }
  0x14   : > { %v166_v3 = vpack.c.bf16 %v158_v2, %v157_v1  ;;  %v156_v5 = vld [vmem:[%s457_s22 + $0x68] sm:$0xff]  ;;  %v153_v7 = vld [vmem:[%s457_s22 + $0x50] sm:$0xff]  ;;  %v154_v8 = vld [vmem:[%s457_s22 + $0x58] sm:$0xff] }
  0x15   : > { %v165_v6 = vpack.c.bf16 %v156_v5, %v155_v4  ;;  %v164_v9 = vpack.c.bf16 %v154_v8, %v153_v7  ;;  %v151_v10 = vld [vmem:[%s457_s22 + $0x40] sm:$0xff]  ;;  %v152_v11 = vld [vmem:[%s457_s22 + $0x48] sm:$0xff]  ;;  %v149_v13 = vld [vmem:[%s457_s22 + $0x30] sm:$0xff] }
  0x16   : > { %337 = vmatpush3.bf16.xpose.msra.mxu0 %v166_v3  ;;  %v163_v12 = vpack.c.bf16 %v152_v11, %v151_v10  ;;  %v150_v14 = vld [vmem:[%s457_s22 + $0x38] sm:$0xff]  ;;  %v147_v16 = vld [vmem:[%s457_s22 + $0x20] sm:$0xff]  ;;  %v148_v17 = vld [vmem:[%s457_s22 + $0x28] sm:$0xff] }
  0x17   : > { %338 = vmatprep.subr.bf16.mxu0 %v407_v0  ;;  %v162_v15 = vpack.c.bf16 %v150_v14, %v149_v13  ;;  %v161_v18 = vpack.c.bf16 %v148_v17, %v147_v16  ;;  %v145_v19 = vld [vmem:[%s457_s22 + $0x10] sm:$0xff]  ;;  %v146_v20 = vld [vmem:[%s457_s22 + $0x18] sm:$0xff]  ;;  %v143_v22 = vld [vmem:[%s457_s22] sm:$0xff] }
  0x18   : > { %v160_v21 = vpack.c.bf16 %v146_v20, %v145_v19  ;;  %v144_v23 = vld [vmem:[%s457_s22 + $0x8] sm:$0xff] }
  0x19   : > { %v159_v24 = vpack.c.bf16 %v144_v23, %v143_v22 }
  0x1e   : > { %339 = vmatpush3.bf16.xpose.msra.mxu0 %v165_v6 }
  0x1f   : > { %340 = vmatprep.subr.bf16.mxu0 %v407_v0 }
  0x26   : > { %341 = vmatpush3.bf16.xpose.msra.mxu0 %v164_v9 }
  0x27   : > { %342 = vmatprep.subr.bf16.mxu0 %v407_v0 }
  0x2e   : > { %343 = vmatpush3.bf16.xpose.msra.mxu0 %v163_v12 }
  0x2f   : > { %344 = vmatprep.subr.bf16.mxu0 %v407_v0 }
  0x36   : > { %345 = vmatpush3.bf16.xpose.msra.mxu0 %v162_v15 }
  0x37   : > { %346 = vmatprep.subr.bf16.mxu0 %v407_v0 }
  0x3e   : > { %347 = vmatpush3.bf16.xpose.msra.mxu0 %v161_v18 }
  0x3f   : > { %348 = vmatprep.subr.bf16.mxu0 %v407_v0 }
  0x46   : > { %349 = vmatpush3.bf16.xpose.msra.mxu0 %v160_v21 }
  0x47   : > { %350 = vmatprep.subr.bf16.mxu0 %v407_v0 }
  0x4e   : > { %351 = vmatpush3.bf16.xpose.msra.mxu0 %v159_v24 }
  0x55   : > { %353 = vmatmul.mubr.bf16.vlgmr.msra.gmra.mxu0 %v382_v25 }
 0x115   : > { %v207_v26 = vpop.f32.mrf.mxu0 }
 0x116   : > { %v214_v27 = vmul.f32 14.285714, %v207_v26 }
 0x117   : > { %v354_v28 = vpop.f32.mrf.mxu0 }
 0x118   : > { %216 = vst [vmem:[%s133_s27] sm:$0xff] %v214_v27  ;;  %224 = sbr.rel (!%p449_p4) target bundleno = 293 (0x125), region = 32 }
 0x119   : > { %v210_v29 = vpop.f32.mrf.mxu0 }
 0x11a   : > { %v215_v30 = vmul.f32 14.285714, %v210_v29 }
 0x11b   : > { %v355_v31 = vpop.f32.mrf.mxu0 }
 0x11c   : > { %217 = vst [vmem:[%s133_s27 + $0x8] sm:$0xff] %v215_v30 }
 0x11f   : > { %v257_v32 = vld [vmem:[%s133_s27] sm:$0xff] }
 0x120   : > { %258 = vst [vmem:[%s226_s3] sm:$0xff] %v257_v32 }
 0x123   : > { %v259_v33 = vld [vmem:[%s133_s27 + $0x8] sm:$0xff] }
 0x124   : > { %260 = vst [vmem:[%s226_s3 + $0x20] sm:$0xff] %v259_v33 }
 0x125 PF: > { %p9_p8 = scmp.ge.s32.totalorder %s439_s13, 6   ;;  %s499_s9 = smov %s401_s10 }
 0x126   : > { %s500_s10 = smov %s447_s16  ;;  %s501_s11 = smov %s439_s13 }
 0x127   :  { %11 = sbr.rel (!%p9_p8) target bundleno = 2 (0x2), region = 96 }

// kernel: _moco_step.7
= control target key start
LH: loop header
LB: loop body
LE: loop exit
PB: predicated region body
PF: predicated region fallthrough
CT: control target
= control target key end

     0   :  { %v482_v1 = vmov 0   ;;  %v41_v34 = vlaneseq  ;;  %s624_s1 = inlined_call_operand.vmem [shape: bf16[128,256], index: 1, kind: input, shape index: {}]   ;;  %s625_s0 = inlined_call_operand.vmem [shape: bf16[16,128], index: 0, kind: input, shape index: {}]   ;;  %s626_s3 = inlined_call_operand.vmem [shape: bf16[256,128], index: 3, kind: input, shape index: {}]   ;;  %s627_s2 = inlined_call_operand.vmem [shape: f32[1,256], index: 2, kind: input, shape index: {}]   ;;  %s628_s4 = inlined_call_operand.vmem [shape: f32[1,128], index: 4, kind: input, shape index: {}]   ;;  %s629_s5 = inlined_call_operand.vmem [shape: f32[16,128], index: 5, kind: output, shape index: {}]  }
   0x1   :  { %v437_v0 = vld [vmem:[%s624_s1 + $0x74] ss:$8 sps:$4 sm:$0xff]   ;;  %169 = vmatprep.mubr.bf16.mxu0 %v482_v1  ;;  %v439_v2 = vld [vmem:[%s624_s1 + $0x70] ss:$8 sps:$4 sm:$0xff]   ;;  %v440_v3 = vld [vmem:[%s624_s1 + $0x64] ss:$8 sps:$4 sm:$0xff]  }
   0x2   :  { %137 = vmatprep.subr.bf16.mxu0 %v437_v0  ;;  %v442_v4 = vld [vmem:[%s624_s1 + $0x60] ss:$8 sps:$4 sm:$0xff]   ;;  %v443_v5 = vld [vmem:[%s624_s1 + $0x54] ss:$8 sps:$4 sm:$0xff]   ;;  %v445_v6 = vld [vmem:[%s624_s1 + $0x50] ss:$8 sps:$4 sm:$0xff]  }
   0x3   :  { %138 = vmatpush1.bf16.msra.mxu0 %v439_v2  ;;  %v446_v7 = vld [vmem:[%s624_s1 + $0x44] ss:$8 sps:$4 sm:$0xff]   ;;  %v448_v8 = vld [vmem:[%s624_s1 + $0x40] ss:$8 sps:$4 sm:$0xff]   ;;  %v449_v9 = vld [vmem:[%s624_s1 + $0x34] ss:$8 sps:$4 sm:$0xff]  }
   0x4   :  { %139 = vmatprep.subr.bf16.mxu0 %v440_v3  ;;  %v462_v10 = vld [vmem:[%s626_s3 + $0x78] sm:$0xff]   ;;  %v452_v13 = vld [vmem:[%s624_s1 + $0x24] ss:$8 sps:$4 sm:$0xff]   ;;  %v464_v14 = vld [vmem:[%s626_s3 + $0x70] sm:$0xff]   ;;  %v42_v35 = vshrl.u32 %v41_v34, 7 }
   0x5   :  { %v451_v11 = vld [vmem:[%s624_s1 + $0x30] ss:$8 sps:$4 sm:$0xff]   ;;  %414 = vmatprep.subr.bf16.mxu1 %v462_v10  ;;  %v466_v16 = vld [vmem:[%s626_s3 + $0x68] sm:$0xff]   ;;  %v455_v18 = vld [vmem:[%s624_s1 + $0x14] ss:$8 sps:$4 sm:$0xff]  }
   0x6   :  { %v463_v12 = vld [vmem:[%s626_s3 + $0x38] sm:$0xff]   ;;  %v465_v15 = vld [vmem:[%s626_s3 + $0x30] sm:$0xff]   ;;  %v454_v17 = vld [vmem:[%s624_s1 + $0x20] ss:$8 sps:$4 sm:$0xff]   ;;  %v47_v36 = vsub.s32 1, %v42_v35  ;;  %v43_v37 = vsub.s32 0, %v42_v35 }
   0x7   :  { %140 = vmatpush1.bf16.msra.mxu0 %v442_v4  ;;  %415 = vmatpush3.bf16.msra.mxu1 %v463_v12  ;;  %v467_v19 = vld [vmem:[%s626_s3 + $0x28] sm:$0xff]   ;;  %v468_v20 = vld [vmem:[%s626_s3 + $0x60] sm:$0xff]   ;;  %v457_v21 = vld [vmem:[%s624_s1 + $0x10] ss:$8 sps:$4 sm:$0xff]  }
   0x8   :  { %141 = vmatprep.subr.bf16.mxu0 %v443_v5  ;;  %416 = vmatprep.subr.bf16.mxu1 %v464_v14  ;;  %v469_v22 = vld [vmem:[%s626_s3 + $0x20] sm:$0xff]   ;;  %v470_v24 = vld [vmem:[%s626_s3 + $0x58] sm:$0xff]   ;;  %v472_v28 = vld [vmem:[%s626_s3 + $0x50] sm:$0xff]  }
   0x9   :  { %v458_v23 = vld [vmem:[%s624_s1 + $0x4] ss:$8 sps:$4 sm:$0xff]   ;;  %v460_v25 = vld [vmem:[%s624_s1] ss:$8 sps:$4 sm:$0xff]   ;;  %v471_v26 = vld [vmem:[%s626_s3 + $0x18] sm:$0xff]  }
   0xa   :  { %v461_v27 = vld [vmem:[%s625_s0] sm:$0xff]   ;;  %v473_v29 = vld [vmem:[%s626_s3 + $0x10] sm:$0xff]   ;;  %v474_v30 = vld [vmem:[%s626_s3 + $0x48] sm:$0xff]  }
   0xb   :  { %142 = vmatpush1.bf16.msra.mxu0 %v445_v6  ;;  %417 = vmatpush3.bf16.msra.mxu1 %v465_v15  ;;  %v475_v31 = vld [vmem:[%s626_s3 + $0x8] sm:$0xff]   ;;  %v476_v32 = vld [vmem:[%s626_s3 + $0x40] sm:$0xff]  }
   0xc   :  { %143 = vmatprep.subr.bf16.mxu0 %v446_v7  ;;  %418 = vmatprep.subr.bf16.mxu1 %v466_v16  ;;  %v477_v33 = vld [vmem:[%s626_s3] sm:$0xff]  }
   0xd   :  { %v39_v38 = vld [vmem:[%s627_s2] sm:$0x3] }
   0xe   :  { %v48_v40 = vrot.slane %v39_v38, %v47_v36  ;;  %v44_v41 = vrot.slane %v39_v38, %v43_v37  ;;  %v397_v57 = vld [vmem:[%s628_s4] ss:$0 sm:$0xff] }
   0xf   :  { %144 = vmatpush1.bf16.msra.mxu0 %v448_v8  ;;  %419 = vmatpush3.bf16.msra.mxu1 %v467_v19 }
  0x10   :  { %145 = vmatprep.subr.bf16.mxu0 %v449_v9  ;;  %420 = vmatprep.subr.bf16.mxu1 %v468_v20 }
  0x13   :  { %146 = vmatpush1.bf16.msra.mxu0 %v451_v11  ;;  %421 = vmatpush3.bf16.msra.mxu1 %v469_v22 }
  0x14   :  { %147 = vmatprep.subr.bf16.mxu0 %v452_v13  ;;  %422 = vmatprep.subr.bf16.mxu1 %v470_v24 }
  0x17   :  { %148 = vmatpush1.bf16.msra.mxu0 %v454_v17  ;;  %423 = vmatpush3.bf16.msra.mxu1 %v471_v26 }
  0x18   :  { %149 = vmatprep.subr.bf16.mxu0 %v455_v18  ;;  %424 = vmatprep.subr.bf16.mxu1 %v472_v28 }
  0x1b   :  { %150 = vmatpush1.bf16.msra.mxu0 %v457_v21  ;;  %425 = vmatpush3.bf16.msra.mxu1 %v473_v29 }
  0x1c   :  { %151 = vmatprep.subr.bf16.mxu0 %v458_v23  ;;  %426 = vmatprep.subr.bf16.mxu1 %v474_v30 }
  0x1f   :  { %152 = vmatpush1.bf16.msra.mxu0 %v460_v25  ;;  %427 = vmatpush3.bf16.msra.mxu1 %v475_v31 }
  0x20   :  { %428 = vmatprep.subr.bf16.mxu1 %v476_v32 }
  0x22   :  { %170 = vmatmul.mubr.bf16.vlgmr.msra.gmra.mxu0 %v461_v27 }
  0x23   :  { %429 = vmatpush3.bf16.msra.mxu1 %v477_v33 }
  0xe2   :  { %v171_v39 = vpop.f32.mrf.mxu0 }
  0xe3   :  { %v172_v46 = vadd.f32 %v171_v39, %v44_v41 }
  0xe4   :  { %v173_v42 = vpop.f32.mrf.mxu0 }
  0xe5   :  { %v174_v44 = vadd.f32 %v173_v42, %v48_v40  ;;  %v180_v52 = vmax.f32 %v172_v46, 0.0 }
  0xe6   :  { %v175_v43 = vpop.f32.mrf.mxu0 }
  0xe7   :  { %v176_v45 = vadd.f32 %v175_v43, %v44_v41  ;;  %v181_v50 = vmax.f32 %v174_v44, 0.0 }
  0xe8   :  { %v177_v47 = vpop.f32.mrf.mxu0 }
  0xe9   :  { %v178_v48 = vadd.f32 %v177_v47, %v48_v40  ;;  %v182_v49 = vmax.f32 %v176_v45, 0.0 }
  0xeb   :  { %v183_v51 = vmax.f32 %v178_v48, 0.0  ;;  %v184_v54 = vpack.c.bf16 %v182_v49, %v180_v52 }
  0xed   :  { %v185_v53 = vpack.c.bf16 %v183_v51, %v181_v50 }
  0xef   :  { %353 = vmatprep.mubr.bf16.mxu1 %v185_v53 }
  0xf0   :  { %354 = vmatmul.mubr.bf16.vlgmr.msra.gmra.mxu1 %v184_v54 }
 0x1b0   :  { %v430_v55 = vpop.f32.mrf.mxu1 }
 0x1b2   :  { %v431_v56 = vpop.f32.mrf.mxu1 }
 0x1b3   :  { %v432_v58 = vadd.f32 %v431_v56, %v430_v55 }
 0x1b4   :  { %v433_v59 = vpop.f32.mrf.mxu1 }
 0x1b5   :  { %v356_v60 = vadd.f32 %v432_v58, %v397_v57 }
 0x1b6   :  { %v434_v61 = vpop.f32.mrf.mxu1 }
 0x1b7   :  { %v435_v62 = vadd.f32 %v434_v61, %v433_v59  ;;  %v362_v63 = vmul.f32 %v356_v60, %v356_v60 }
 0x1b9   :  { %v359_v0 = vadd.f32 %v435_v62, %v397_v57  ;;  %364 = vadd.xlane.f32.xlu0 %v362_v63 }
 0x1bb   :  { %v363_v1 = vmul.f32 %v359_v0, %v359_v0 }
 0x1bd   :  { %366 = vadd.xlane.f32.xlu0 %v363_v1 }
 0x242   :  { %v365_v2 = vpop.xlane.xlu0 %364 }
 0x243   :  { %v368_v3 = vmax.f32 %v365_v2, 1e-24 }
 0x245   :  { %478 = vrsqrt.f32 %v368_v3 }
 0x246   :  { %v367_v4 = vpop.xlane.xlu0 %366 }
 0x247   :  { %v369_v5 = vmax.f32 %v367_v4, 1e-24 }
 0x249   :  { %480 = vrsqrt.f32 %v369_v5 }
 0x252   :  { %v479_v6 = vpop.eup %478 }
 0x253   :  { %v372_v7 = vmul.f32 %v479_v6, %v356_v60 }
 0x255   :  { %374 = vst [vmem:[%s629_s5] sm:$0xff] %v372_v7 }
 0x256   :  { %v481_v8 = vpop.eup %480 }
 0x257   :  { %v373_v9 = vmul.f32 %v481_v8, %v359_v0 }
 0x259   :  { %375 = vst [vmem:[%s629_s5 + $0x8] sm:$0xff] %v373_v9 }

// kernel: _moco_step.9
= control target key start
LH: loop header
LB: loop body
LE: loop exit
PB: predicated region body
PF: predicated region fallthrough
CT: control target
= control target key end

     0   :  { %vm68_vm0 = vcmask 7168   ;;  %s163_s1 = inlined_call_operand.vmem [shape: f32[16,128], index: 1, kind: input, shape index: {}]   ;;  %s164_s2 = inlined_call_operand.vmem [shape: f32[16,128], index: 2, kind: input, shape index: {}]   ;;  %s165_s0 = inlined_call_operand.<no memory space> [shape: s32[1], index: 0, kind: input, shape index: {}]   ;;  %s166_s3 = inlined_call_operand.vmem [shape: f32[512,128], index: 3, kind: input, shape index: {}, may-alias: {3,4}]   ;;  %s167_s4 = inlined_call_operand.vmem [shape: f32[512,128], index: 4, kind: output, shape index: {0}, may-alias: {3,4}]   ;;  %s168_s5 = inlined_call_operand.vmem [shape: f32[16,1], index: 5, kind: output, shape index: {1}]  }
   0x1   :  { %v54_v0 = vld [vmem:[%s164_s2] sm:$0xff]  ;;  %s107_s24 = sshll.u32 %s165_s0, 1  ;;  %v55_v2 = vld [vmem:[%s164_s2 + $0x8] sm:$0xff] }
   0x2   :  { %v58_v1 = vld [vmem:[%s163_s1] sm:$0xff]  ;;  %p48_p0 = scmp.lt.s32.totalorder %s107_s24, 63  ;;  %v59_v4 = vld [vmem:[%s163_s1 + $0x8] sm:$0xff] }
   0x3   :  { %v60_v3 = vmul.f32 %v58_v1, %v54_v0  ;;  %v61_v5 = vmul.f32 %v59_v4, %v55_v2 }
   0x4   :  { %s170_s24 = smov (!%p48_p0, %s107_s24), 63 }
   0x5   :  { %62 = vadd.xlane.f32.xlu0 %v60_v3  ;;  %s108_s28 = sshll.u32 %s170_s24, 3 }
   0x6   :  { %s51_s6 = scalar_lea.vmem %s167_s4, %s108_s28 }
   0x7   :  { %56 = vst [vmem:[%s51_s6] sm:$0xff] %v54_v0  ;;  %57 = vst [vmem:[%s51_s6 + $0x8] sm:$0xff] %v55_v2 }
   0x9   :  { %64 = vadd.xlane.f32.xlu0 %v61_v5 }
  0x8e   :  { %v63_v6 = vpop.xlane.xlu0 %62 }
  0x8f   :  { %v66_v7 = vmul.f32 14.285714, %v63_v6 }
  0x91   :  { %69 = vst.msk [vmem:[%s168_s5] sm:$0xff] %vm68_vm0, %v66_v7 }
  0x92   :  { %v65_v8 = vpop.xlane.xlu0 %64 }
  0x93   :  { %v67_v9 = vmul.f32 14.285714, %v65_v8 }
  0x95   :  { %70 = vst.msk [vmem:[%s168_s5 + $0x8] sm:$0xff] %vm68_vm0, %v67_v9 }

// kernel: _moco_step.6
= control target key start
LH: loop header
LB: loop body
LE: loop exit
PB: predicated region body
PF: predicated region fallthrough
CT: control target
= control target key end

     0   :  { %17 = vsyncpa [#allocation3], 0  ;;  %s797_s0 = inlined_call_operand.hbm [shape: f32[128,256], index: 0, kind: input, shape index: {}]   ;;  %s798_s1 = inlined_call_operand.vmem [shape: f32[1,256], index: 1, kind: input, shape index: {}]   ;;  %s799_s2 = inlined_call_operand.hbm [shape: f32[256,128], index: 2, kind: input, shape index: {}]   ;;  %s800_s3 = inlined_call_operand.vmem [shape: f32[1,128], index: 3, kind: input, shape index: {}]   ;;  %s801_s4 = inlined_call_operand.hbm [shape: f32[128,256], index: 4, kind: input, shape index: {}, may-alias: {4,8}]   ;;  %s802_s5 = inlined_call_operand.vmem [shape: f32[1,256], index: 5, kind: input, shape index: {}, may-alias: {5,9}]   ;;  %s803_s6 = inlined_call_operand.hbm [shape: f32[256,128], index: 6, kind: input, shape index: {}, may-alias: {6,10}]   ;;  %s804_s7 = inlined_call_operand.vmem [shape: f32[1,128], index: 7, kind: input, shape index: {}, may-alias: {7,11}]   ;;  %s805_s8 = inlined_call_operand.hbm [shape: f32[128,256], index: 8, kind: output, shape index: {0}, may-alias: {4,8}]   ;;  %s806_s9 = inlined_call_operand.vmem [shape: f32[1,256], index: 9, kind: output, shape index: {1}, may-alias: {5,9}]   ;;  %s807_s10 = inlined_call_operand.hbm [shape: f32[256,128], index: 10, kind: output, shape index: {2}, may-alias: {6,10}]   ;;  %s808_s11 = inlined_call_operand.vmem [shape: f32[1,128], index: 11, kind: output, shape index: {3}, may-alias: {7,11}]  }
   0x1   :  { %18 = vsyncpa [#allocation6], 0 }
   0x2   :  { %19 = vsyncpa [#allocation9], 0 }
   0x3   :  { %20 = vsyncpa [#allocation4], 0 }
   0x4   :  { %21 = vsyncpa [#allocation12], 0  ;;  %s673_s17 = smov [#allocation5]  }
   0x5   :  { %s41_s18 = sshll.u32 %s673_s17, 4  ;;  %s42_s18 = int_to_ptr.vmem [resolvable:$true] %s41_s18 }
   0x6   :  { %s551_s19 = scalar_lea.vmem %s42_s18, 4096  ;;  %p556_p1 = scmp.lt.s32.totalorder %s42_s18, %s42_s18 }
   0x7   :  { %p552_p0 = scmp.ne.s32.totalorder %s42_s18, %s551_s19  ;;  %p557_p2 = scmp.lt.s32.totalorder %s551_s19, %s551_s19 }
   0x9   :  { %p558_p3 = por %p557_p2, %p556_p1 }
   0xb   :  { %p559_p4 = pnand %p558_p3, %p552_p0 }
   0xd   :  { %562 = shalt.err (!%p559_p4)
}
   0xe   :  { %s674_s20 = smov 128   ;;  %s675_s21 = smov 8  }
   0xf   :  { %47 = dma.hbm_to_vmem [thread:$0]  %s799_s2, 4096, %s42_s18, [#allocation6], %s674_s20, %s674_s20, %s675_s21  }
  0x10   :  { %s676_s24 = smov [#allocation2]  }
  0x11   :  { %s27_s25 = sshll.u32 %s676_s24, 4  ;;  %s28_s25 = int_to_ptr.vmem [resolvable:$true] %s27_s25 }
  0x12   :  { %s571_s26 = scalar_lea.vmem %s28_s25, 4096  ;;  %p576_p6 = scmp.lt.s32.totalorder %s28_s25, %s28_s25 }
  0x13   :  { %p572_p5 = scmp.ne.s32.totalorder %s28_s25, %s571_s26  ;;  %p577_p7 = scmp.lt.s32.totalorder %s571_s26, %s571_s26 }
  0x15   :  { %p578_p8 = por %p577_p7, %p576_p6 }
  0x17   :  { %p579_p9 = pnand %p578_p8, %p572_p5 }
  0x19   :  { %582 = shalt.err (!%p579_p9)
}
  0x1a   :  { %s677_s27 = smov 256   ;;  %s678_s28 = smov 16  }
  0x1b   :  { %33 = dma.hbm_to_vmem [thread:$0]  %s797_s0, 4096, %s28_s25, [#allocation3], %s677_s27, %s677_s27, %s678_s28  }
  0x1c   :  { %s679_s2 = smov [#allocation7]   ;;  %s680_s13 = smov [#allocation8]  }
  0x1d   :  { %s55_s12 = sshll.u32 %s679_s2, 4  ;;  %s69_s14 = sshll.u32 %s680_s13, 4  ;;  %s56_s12 = int_to_ptr.vmem [resolvable:$true] %s55_s12  ;;  %s70_s14 = int_to_ptr.vmem [resolvable:$true] %s69_s14 }
  0x1e   :  { %s591_s15 = scalar_lea.vmem %s56_s12, 4096  ;;  %p596_p11 = scmp.lt.s32.totalorder %s56_s12, %s56_s12 }
  0x1f   :  { %p592_p10 = scmp.ne.s32.totalorder %s56_s12, %s591_s15  ;;  %p597_p12 = scmp.lt.s32.totalorder %s591_s15, %s591_s15 }
  0x21   :  { %p598_p13 = por %p597_p12, %p596_p11 }
  0x23   :  { %p599_p0 = pnand %p598_p13, %p592_p10 }
  0x25   :  { %602 = shalt.err (!%p599_p0)
}
  0x26   :  { %61 = dma.hbm_to_vmem [thread:$0]  %s801_s4, 4096, %s56_s12, [#allocation6], %s677_s27, %s677_s27, %s678_s28  }
  0x27   :  { %s611_s0 = scalar_lea.vmem %s70_s14, 4096  ;;  %p616_p2 = scmp.lt.s32.totalorder %s70_s14, %s70_s14 }
  0x28   :  { %p612_p1 = scmp.ne.s32.totalorder %s70_s14, %s611_s0  ;;  %p617_p3 = scmp.lt.s32.totalorder %s611_s0, %s611_s0 }
  0x2a   :  { %p618_p4 = por %p617_p3, %p616_p2 }
  0x2c   :  { %p619_p5 = pnand %p618_p4, %p612_p1 }
  0x2e   :  { %622 = shalt.err (!%p619_p5)
}
  0x2f   :  { %75 = dma.hbm_to_vmem [thread:$0]  %s803_s6, 4096, %s70_s14, [#allocation9], %s674_s20, %s674_s20, %s675_s21  }
  0x30   :  { %663 = dma.done.wait [#allocation3], 4096  }
  0x31   :  { %664 = vsyncadd [#allocation3], 4294963200 }
  0x32   :  { %665 = dma.done.wait [#allocation6], 8192  }
  0x33   :  { %666 = vsyncadd [#allocation6], 4294959104 }
  0x34   :  { %667 = dma.done.wait [#allocation9], 4096  }
  0x35   :  { %668 = vsyncadd [#allocation9], 4294963200  ;;  %v90_v0 = vld [vmem:[#allocation7] sm:$0xff]  ;;  %v91_v2 = vld [vmem:[#allocation7 + $0x8] sm:$0xff]  ;;  %s681_s4 = smov [#allocation10]  }
  0x36   :  { %v154_v1 = vld [vmem:[#allocation2] sm:$0xff]  ;;  %v122_v3 = vmul.f32 0.999, %v90_v0  ;;  %v123_v5 = vmul.f32 0.999, %v91_v2  ;;  %v155_v6 = vld [vmem:[#allocation2 + $0x8] sm:$0xff] }
  0x37   :  { %v186_v4 = vmul.f32 0.001, %v154_v1  ;;  %v92_v7 = vld [vmem:[#allocation7 + $0x10] sm:$0xff]  ;;  %v187_v10 = vmul.f32 0.001, %v155_v6  ;;  %v93_v13 = vld [vmem:[#allocation7 + $0x18] sm:$0xff] }
  0x38   :  { %v156_v8 = vld [vmem:[#allocation2 + $0x10] sm:$0xff]  ;;  %v124_v11 = vmul.f32 0.999, %v92_v7  ;;  %v157_v14 = vld [vmem:[#allocation2 + $0x18] sm:$0xff]  ;;  %v94_v15 = vld [vmem:[#allocation7 + $0x20] sm:$0xff]  ;;  %s495_s6 = sshll.u32 %s681_s4, 4  ;;  %s496_s6 = int_to_ptr.vmem [resolvable:$true] %s495_s6 }
  0x39   :  { %v218_v9 = vadd.f32 %v186_v4, %v122_v3  ;;  %v188_v12 = vmul.f32 0.001, %v156_v8  ;;  %v219_v16 = vadd.f32 %v187_v10, %v123_v5  ;;  %v125_v18 = vmul.f32 0.999, %v93_v13  ;;  %v158_v20 = vld [vmem:[#allocation2 + $0x20] sm:$0xff]  ;;  %v95_v21 = vld [vmem:[#allocation7 + $0x28] sm:$0xff]  ;;  %p628_p7 = scmp.lt.s32.totalorder %s496_s6, %s496_s6 }
  0x3a   :  { %v189_v19 = vmul.f32 0.001, %v157_v14  ;;  %v126_v22 = vmul.f32 0.999, %v94_v15  ;;  %v190_v23 = vmul.f32 0.001, %v158_v20 }
  0x3b   :  { %250 = vst [vmem:[#allocation10] sm:$0xff] %v218_v9  ;;  %v220_v17 = vadd.f32 %v188_v12, %v124_v11  ;;  %v127_v24 = vmul.f32 0.999, %v95_v21  ;;  %251 = vst [vmem:[#allocation10 + $0x8] sm:$0xff] %v219_v16  ;;  %v159_v26 = vld [vmem:[#allocation2 + $0x28] sm:$0xff]  ;;  %v96_v27 = vld [vmem:[#allocation7 + $0x30] sm:$0xff] }
  0x3c   :  { %v221_v25 = vadd.f32 %v189_v19, %v125_v18  ;;  %v160_v28 = vld [vmem:[#allocation2 + $0x30] sm:$0xff]  ;;  %v222_v29 = vadd.f32 %v190_v23, %v126_v22  ;;  %v191_v30 = vmul.f32 0.001, %v159_v26  ;;  %v128_v31 = vmul.f32 0.999, %v96_v27  ;;  %v97_v33 = vld [vmem:[#allocation7 + $0x38] sm:$0xff] }
  0x3d   :  { %252 = vst [vmem:[#allocation10 + $0x10] sm:$0xff] %v220_v17  ;;  %v192_v32 = vmul.f32 0.001, %v160_v28  ;;  %v161_v34 = vld [vmem:[#allocation2 + $0x38] sm:$0xff]  ;;  %v98_v35 = vld [vmem:[#allocation7 + $0x40] sm:$0xff]  ;;  %v99_v41 = vld [vmem:[#allocation7 + $0x48] sm:$0xff] }
  0x3e   :  { %253 = vst [vmem:[#allocation10 + $0x18] sm:$0xff] %v221_v25  ;;  %254 = vst [vmem:[#allocation10 + $0x20] sm:$0xff] %v222_v29  ;;  %v223_v36 = vadd.f32 %v191_v30, %v127_v24  ;;  %v129_v38 = vmul.f32 0.999, %v97_v33  ;;  %v193_v39 = vmul.f32 0.001, %v161_v34 }
  0x3f   :  { %v224_v37 = vadd.f32 %v192_v32, %v128_v31  ;;  %v162_v40 = vld [vmem:[#allocation2 + $0x40] sm:$0xff]  ;;  %v130_v42 = vmul.f32 0.999, %v98_v35  ;;  %v131_v44 = vmul.f32 0.999, %v99_v41  ;;  %v163_v46 = vld [vmem:[#allocation2 + $0x48] sm:$0xff] }
  0x40   :  { %v194_v43 = vmul.f32 0.001, %v162_v40  ;;  %255 = vst [vmem:[#allocation10 + $0x28] sm:$0xff] %v223_v36  ;;  %v225_v45 = vadd.f32 %v193_v39, %v129_v38  ;;  %v100_v47 = vld [vmem:[#allocation7 + $0x50] sm:$0xff]  ;;  %v195_v50 = vmul.f32 0.001, %v163_v46 }
  0x41   :  { %256 = vst [vmem:[#allocation10 + $0x30] sm:$0xff] %v224_v37  ;;  %v164_v48 = vld [vmem:[#allocation2 + $0x50] sm:$0xff]  ;;  %v132_v51 = vmul.f32 0.999, %v100_v47  ;;  %v101_v53 = vld [vmem:[#allocation7 + $0x58] sm:$0xff]  ;;  %v102_v55 = vld [vmem:[#allocation7 + $0x60] sm:$0xff] }
  0x42   :  { %v226_v49 = vadd.f32 %v194_v43, %v130_v42  ;;  %v196_v52 = vmul.f32 0.001, %v164_v48  ;;  %257 = vst [vmem:[#allocation10 + $0x38] sm:$0xff] %v225_v45  ;;  %v165_v54 = vld [vmem:[#allocation2 + $0x58] sm:$0xff]  ;;  %v227_v56 = vadd.f32 %v195_v50, %v131_v44  ;;  %v133_v58 = vmul.f32 0.999, %v101_v53 }
  0x43   :  { %v197_v59 = vmul.f32 0.001, %v165_v54  ;;  %v166_v60 = vld [vmem:[#allocation2 + $0x60] sm:$0xff]  ;;  %v103_v61 = vld [vmem:[#allocation7 + $0x68] sm:$0xff]  ;;  %v134_v62 = vmul.f32 0.999, %v102_v55 }
  0x44   :  { %258 = vst [vmem:[#allocation10 + $0x40] sm:$0xff] %v226_v49  ;;  %v228_v57 = vadd.f32 %v196_v52, %v132_v51  ;;  %v198_v63 = vmul.f32 0.001, %v166_v60  ;;  %v135_v0 = vmul.f32 0.999, %v103_v61  ;;  %259 = vst [vmem:[#allocation10 + $0x48] sm:$0xff] %v227_v56 }
  0x45   :  { %v229_v1 = vadd.f32 %v197_v59, %v133_v58  ;;  %v167_v2 = vld [vmem:[#allocation2 + $0x68] sm:$0xff]  ;;  %v104_v3 = vld [vmem:[#allocation7 + $0x70] sm:$0xff]  ;;  %v105_v9 = vld [vmem:[#allocation7 + $0x78] sm:$0xff]  ;;  %s623_s22 = scalar_lea.vmem %s496_s6, 4096 }
  0x46   :  { %260 = vst [vmem:[#allocation10 + $0x50] sm:$0xff] %v228_v57  ;;  %v168_v4 = vld [vmem:[#allocation2 + $0x70] sm:$0xff]  ;;  %v230_v5 = vadd.f32 %v198_v63, %v134_v62  ;;  %v199_v6 = vmul.f32 0.001, %v167_v2  ;;  %v136_v7 = vmul.f32 0.999, %v104_v3  ;;  %p624_p6 = scmp.ne.s32.totalorder %s496_s6, %s623_s22  ;;  %p629_p8 = scmp.lt.s32.totalorder %s623_s22, %s623_s22 }
  0x47   :  { %v200_v8 = vmul.f32 0.001, %v168_v4  ;;  %261 = vst [vmem:[#allocation10 + $0x58] sm:$0xff] %v229_v1  ;;  %v169_v10 = vld [vmem:[#allocation2 + $0x78] sm:$0xff]  ;;  %v106_v11 = vld [vmem:[#allocation7 + $0x80] sm:$0xff]  ;;  %v107_v17 = vld [vmem:[#allocation7 + $0x88] sm:$0xff] }
  0x48   :  { %262 = vst [vmem:[#allocation10 + $0x60] sm:$0xff] %v230_v5  ;;  %v231_v12 = vadd.f32 %v199_v6, %v135_v0  ;;  %v137_v14 = vmul.f32 0.999, %v105_v9  ;;  %v201_v15 = vmul.f32 0.001, %v169_v10  ;;  %v170_v16 = vld [vmem:[#allocation2 + $0x80] sm:$0xff]  ;;  %p630_p9 = por %p629_p8, %p628_p7 }
  0x49   :  { %v232_v13 = vadd.f32 %v200_v8, %v136_v7  ;;  %v138_v18 = vmul.f32 0.999, %v106_v11  ;;  %v202_v19 = vmul.f32 0.001, %v170_v16  ;;  %v139_v20 = vmul.f32 0.999, %v107_v17 }
  0x4a   :  { %263 = vst [vmem:[#allocation10 + $0x68] sm:$0xff] %v231_v12  ;;  %v233_v21 = vadd.f32 %v201_v15, %v137_v14  ;;  %v171_v22 = vld [vmem:[#allocation2 + $0x88] sm:$0xff]  ;;  %v108_v23 = vld [vmem:[#allocation7 + $0x90] sm:$0xff]  ;;  %v109_v29 = vld [vmem:[#allocation7 + $0x98] sm:$0xff]  ;;  %p631_p10 = pnand %p630_p9, %p624_p6 }
  0x4b   :  { %264 = vst [vmem:[#allocation10 + $0x70] sm:$0xff] %v232_v13  ;;  %v172_v24 = vld [vmem:[#allocation2 + $0x90] sm:$0xff]  ;;  %v234_v25 = vadd.f32 %v202_v19, %v138_v18  ;;  %v203_v26 = vmul.f32 0.001, %v171_v22  ;;  %v140_v27 = vmul.f32 0.999, %v108_v23 }
  0x4c   :  { %v204_v28 = vmul.f32 0.001, %v172_v24  ;;  %265 = vst [vmem:[#allocation10 + $0x78] sm:$0xff] %v233_v21  ;;  %v173_v30 = vld [vmem:[#allocation2 + $0x98] sm:$0xff]  ;;  %v110_v31 = vld [vmem:[#allocation7 + $0xa0] sm:$0xff]  ;;  %v111_v37 = vld [vmem:[#allocation7 + $0xa8] sm:$0xff] }
  0x4d   :  { %266 = vst [vmem:[#allocation10 + $0x80] sm:$0xff] %v234_v25  ;;  %v235_v32 = vadd.f32 %v203_v26, %v139_v20  ;;  %v141_v34 = vmul.f32 0.999, %v109_v29  ;;  %v205_v35 = vmul.f32 0.001, %v173_v30  ;;  %v174_v36 = vld [vmem:[#allocation2 + $0xa0] sm:$0xff] }
  0x4e   :  { %v236_v33 = vadd.f32 %v204_v28, %v140_v27  ;;  %v142_v38 = vmul.f32 0.999, %v110_v31  ;;  %v206_v39 = vmul.f32 0.001, %v174_v36  ;;  %v143_v40 = vmul.f32 0.999, %v111_v37 }
  0x4f   :  { %267 = vst [vmem:[#allocation10 + $0x88] sm:$0xff] %v235_v32  ;;  %v237_v41 = vadd.f32 %v205_v35, %v141_v34  ;;  %v175_v42 = vld [vmem:[#allocation2 + $0xa8] sm:$0xff]  ;;  %v112_v43 = vld [vmem:[#allocation7 + $0xb0] sm:$0xff]  ;;  %v113_v49 = vld [vmem:[#allocation7 + $0xb8] sm:$0xff] }
  0x50   :  { %268 = vst [vmem:[#allocation10 + $0x90] sm:$0xff] %v236_v33  ;;  %v176_v44 = vld [vmem:[#allocation2 + $0xb0] sm:$0xff]  ;;  %v238_v45 = vadd.f32 %v206_v39, %v142_v38  ;;  %v207_v46 = vmul.f32 0.001, %v175_v42  ;;  %v144_v47 = vmul.f32 0.999, %v112_v43 }
  0x51   :  { %v208_v48 = vmul.f32 0.001, %v176_v44  ;;  %269 = vst [vmem:[#allocation10 + $0x98] sm:$0xff] %v237_v41  ;;  %v177_v50 = vld [vmem:[#allocation2 + $0xb8] sm:$0xff]  ;;  %v114_v51 = vld [vmem:[#allocation7 + $0xc0] sm:$0xff]  ;;  %v115_v57 = vld [vmem:[#allocation7 + $0xc8] sm:$0xff] }
  0x52   :  { %270 = vst [vmem:[#allocation10 + $0xa0] sm:$0xff] %v238_v45  ;;  %v239_v52 = vadd.f32 %v207_v46, %v143_v40  ;;  %v145_v54 = vmul.f32 0.999, %v113_v49  ;;  %v209_v55 = vmul.f32 0.001, %v177_v50  ;;  %v178_v56 = vld [vmem:[#allocation2 + $0xc0] sm:$0xff] }
  0x53   :  { %v240_v53 = vadd.f32 %v208_v48, %v144_v47  ;;  %v146_v58 = vmul.f32 0.999, %v114_v51  ;;  %v210_v59 = vmul.f32 0.001, %v178_v56  ;;  %v147_v60 = vmul.f32 0.999, %v115_v57 }
  0x54   :  { %271 = vst [vmem:[#allocation10 + $0xa8] sm:$0xff] %v239_v52  ;;  %v241_v61 = vadd.f32 %v209_v55, %v145_v54  ;;  %v179_v62 = vld [vmem:[#allocation2 + $0xc8] sm:$0xff]  ;;  %v116_v63 = vld [vmem:[#allocation7 + $0xd0] sm:$0xff]  ;;  %v117_v5 = vld [vmem:[#allocation7 + $0xd8] sm:$0xff] }
  0x55   :  { %272 = vst [vmem:[#allocation10 + $0xb0] sm:$0xff] %v240_v53  ;;  %v180_v0 = vld [vmem:[#allocation2 + $0xd0] sm:$0xff]  ;;  %v242_v1 = vadd.f32 %v210_v59, %v146_v58  ;;  %v211_v2 = vmul.f32 0.001, %v179_v62  ;;  %v148_v3 = vmul.f32 0.999, %v116_v63 }
  0x56   :  { %v212_v4 = vmul.f32 0.001, %v180_v0  ;;  %273 = vst [vmem:[#allocation10 + $0xb8] sm:$0xff] %v241_v61  ;;  %v181_v6 = vld [vmem:[#allocation2 + $0xd8] sm:$0xff]  ;;  %v118_v7 = vld [vmem:[#allocation7 + $0xe0] sm:$0xff]  ;;  %v119_v13 = vld [vmem:[#allocation7 + $0xe8] sm:$0xff] }
  0x57   :  { %274 = vst [vmem:[#allocation10 + $0xc0] sm:$0xff] %v242_v1  ;;  %v243_v8 = vadd.f32 %v211_v2, %v147_v60  ;;  %v149_v10 = vmul.f32 0.999, %v117_v5  ;;  %v213_v11 = vmul.f32 0.001, %v181_v6  ;;  %v182_v12 = vld [vmem:[#allocation2 + $0xe0] sm:$0xff] }
  0x58   :  { %v244_v9 = vadd.f32 %v212_v4, %v148_v3  ;;  %v150_v14 = vmul.f32 0.999, %v118_v7  ;;  %v214_v15 = vmul.f32 0.001, %v182_v12  ;;  %v151_v16 = vmul.f32 0.999, %v119_v13 }
  0x59   :  { %275 = vst [vmem:[#allocation10 + $0xc8] sm:$0xff] %v243_v8  ;;  %v245_v17 = vadd.f32 %v213_v11, %v149_v10  ;;  %v183_v18 = vld [vmem:[#allocation2 + $0xe8] sm:$0xff]  ;;  %v120_v19 = vld [vmem:[#allocation7 + $0xf0] sm:$0xff]  ;;  %v121_v25 = vld [vmem:[#allocation7 + $0xf8] sm:$0xff] }
  0x5a   :  { %276 = vst [vmem:[#allocation10 + $0xd0] sm:$0xff] %v244_v9  ;;  %v184_v20 = vld [vmem:[#allocation2 + $0xf0] sm:$0xff]  ;;  %v246_v21 = vadd.f32 %v214_v15, %v150_v14  ;;  %v215_v22 = vmul.f32 0.001, %v183_v18  ;;  %v152_v23 = vmul.f32 0.999, %v120_v19 }
  0x5b   :  { %v216_v24 = vmul.f32 0.001, %v184_v20  ;;  %277 = vst [vmem:[#allocation10 + $0xd8] sm:$0xff] %v245_v17  ;;  %v185_v26 = vld [vmem:[#allocation2 + $0xf8] sm:$0xff]  ;;  %v292_v27 = vld [vmem:[#allocation8] sm:$0xff]  ;;  %v293_v33 = vld [vmem:[#allocation8 + $0x8] sm:$0xff] }
  0x5c   :  { %278 = vst [vmem:[#allocation10 + $0xe0] sm:$0xff] %v246_v21  ;;  %v247_v28 = vadd.f32 %v215_v22, %v151_v16  ;;  %v153_v30 = vmul.f32 0.999, %v121_v25  ;;  %v217_v31 = vmul.f32 0.001, %v185_v26  ;;  %v356_v32 = vld [vmem:[#allocation5] sm:$0xff] }
  0x5d   :  { %v248_v29 = vadd.f32 %v216_v24, %v152_v23  ;;  %v324_v34 = vmul.f32 0.999, %v292_v27  ;;  %v388_v35 = vmul.f32 0.001, %v356_v32  ;;  %v325_v36 = vmul.f32 0.999, %v293_v33 }
  0x5e   :  { %279 = vst [vmem:[#allocation10 + $0xe8] sm:$0xff] %v247_v28  ;;  %v249_v37 = vadd.f32 %v217_v31, %v153_v30  ;;  %v357_v38 = vld [vmem:[#allocation5 + $0x8] sm:$0xff]  ;;  %v294_v39 = vld [vmem:[#allocation8 + $0x10] sm:$0xff]  ;;  %v295_v45 = vld [vmem:[#allocation8 + $0x18] sm:$0xff] }
  0x5f   :  { %280 = vst [vmem:[#allocation10 + $0xf0] sm:$0xff] %v248_v29  ;;  %v358_v40 = vld [vmem:[#allocation5 + $0x10] sm:$0xff]  ;;  %v420_v41 = vadd.f32 %v388_v35, %v324_v34  ;;  %v389_v42 = vmul.f32 0.001, %v357_v38  ;;  %v326_v43 = vmul.f32 0.999, %v294_v39 }
  0x60   :  { %v390_v44 = vmul.f32 0.001, %v358_v40  ;;  %281 = vst [vmem:[#allocation10 + $0xf8] sm:$0xff] %v249_v37  ;;  %v359_v46 = vld [vmem:[#allocation5 + $0x18] sm:$0xff]  ;;  %v296_v47 = vld [vmem:[#allocation8 + $0x20] sm:$0xff]  ;;  %v297_v53 = vld [vmem:[#allocation8 + $0x28] sm:$0xff] }
  0x61   :  { %452 = vst [vmem:[#allocation11] sm:$0xff] %v420_v41  ;;  %v421_v48 = vadd.f32 %v389_v42, %v325_v36  ;;  %v327_v50 = vmul.f32 0.999, %v295_v45  ;;  %v391_v51 = vmul.f32 0.001, %v359_v46  ;;  %v360_v52 = vld [vmem:[#allocation5 + $0x20] sm:$0xff] }
  0x62   :  { %v422_v49 = vadd.f32 %v390_v44, %v326_v43  ;;  %v328_v54 = vmul.f32 0.999, %v296_v47  ;;  %v392_v55 = vmul.f32 0.001, %v360_v52  ;;  %v329_v56 = vmul.f32 0.999, %v297_v53 }
  0x63   :  { %453 = vst [vmem:[#allocation11 + $0x8] sm:$0xff] %v421_v48  ;;  %v423_v57 = vadd.f32 %v391_v51, %v327_v50  ;;  %v361_v58 = vld [vmem:[#allocation5 + $0x28] sm:$0xff]  ;;  %v298_v59 = vld [vmem:[#allocation8 + $0x30] sm:$0xff] }
  0x64   :  { %454 = vst [vmem:[#allocation11 + $0x10] sm:$0xff] %v422_v49  ;;  %v362_v60 = vld [vmem:[#allocation5 + $0x30] sm:$0xff] }
  0x65   :  { %634 = shalt.err (!%p631_p10)
}
  0x66   :  { %501 = dma.vmem_to_hbm [thread:$0]  %s496_s6, 4096, %s805_s8, [#allocation4], %s677_s27, %s677_s27, %s678_s28   ;;  %v424_v61 = vadd.f32 %v392_v55, %v328_v54  ;;  %v393_v62 = vmul.f32 0.001, %v361_v58  ;;  %v330_v63 = vmul.f32 0.999, %v298_v59 }
  0x67   :  { %v394_v0 = vmul.f32 0.001, %v362_v60  ;;  %455 = vst [vmem:[#allocation11 + $0x18] sm:$0xff] %v423_v57  ;;  %v299_v1 = vld [vmem:[#allocation8 + $0x38] sm:$0xff]  ;;  %v300_v3 = vld [vmem:[#allocation8 + $0x40] sm:$0xff]  ;;  %v301_v9 = vld [vmem:[#allocation8 + $0x48] sm:$0xff] }
  0x68   :  { %v363_v2 = vld [vmem:[#allocation5 + $0x38] sm:$0xff]  ;;  %456 = vst [vmem:[#allocation11 + $0x20] sm:$0xff] %v424_v61  ;;  %v425_v4 = vadd.f32 %v393_v62, %v329_v56  ;;  %v331_v6 = vmul.f32 0.999, %v299_v1  ;;  %v364_v8 = vld [vmem:[#allocation5 + $0x40] sm:$0xff]  ;;  %v365_v14 = vld [vmem:[#allocation5 + $0x48] sm:$0xff] }
  0x69   :  { %v426_v5 = vadd.f32 %v394_v0, %v330_v63  ;;  %v395_v7 = vmul.f32 0.001, %v363_v2  ;;  %v332_v10 = vmul.f32 0.999, %v300_v3  ;;  %v396_v11 = vmul.f32 0.001, %v364_v8 }
  0x6a   :  { %v333_v12 = vmul.f32 0.999, %v301_v9  ;;  %457 = vst [vmem:[#allocation11 + $0x28] sm:$0xff] %v425_v4  ;;  %v302_v15 = vld [vmem:[#allocation8 + $0x50] sm:$0xff]  ;;  %v397_v18 = vmul.f32 0.001, %v365_v14 }
  0x6b   :  { %458 = vst [vmem:[#allocation11 + $0x30] sm:$0xff] %v426_v5  ;;  %v427_v13 = vadd.f32 %v395_v7, %v331_v6  ;;  %v366_v16 = vld [vmem:[#allocation5 + $0x50] sm:$0xff]  ;;  %v428_v17 = vadd.f32 %v396_v11, %v332_v10  ;;  %v334_v19 = vmul.f32 0.999, %v302_v15  ;;  %v303_v21 = vld [vmem:[#allocation8 + $0x58] sm:$0xff]  ;;  %v304_v23 = vld [vmem:[#allocation8 + $0x60] sm:$0xff] }
  0x6c   :  { %v398_v20 = vmul.f32 0.001, %v366_v16  ;;  %v367_v22 = vld [vmem:[#allocation5 + $0x58] sm:$0xff]  ;;  %v429_v24 = vadd.f32 %v397_v18, %v333_v12  ;;  %v335_v26 = vmul.f32 0.999, %v303_v21  ;;  %v368_v28 = vld [vmem:[#allocation5 + $0x60] sm:$0xff] }
  0x6d   :  { %459 = vst [vmem:[#allocation11 + $0x38] sm:$0xff] %v427_v13  ;;  %460 = vst [vmem:[#allocation11 + $0x40] sm:$0xff] %v428_v17  ;;  %v399_v27 = vmul.f32 0.001, %v367_v22  ;;  %v305_v29 = vld [vmem:[#allocation8 + $0x68] sm:$0xff]  ;;  %v306_v35 = vld [vmem:[#allocation8 + $0x70] sm:$0xff] }
  0x6e   :  { %v430_v25 = vadd.f32 %v398_v20, %v334_v19  ;;  %v336_v30 = vmul.f32 0.999, %v304_v23  ;;  %v400_v31 = vmul.f32 0.001, %v368_v28  ;;  %v337_v32 = vmul.f32 0.999, %v305_v29 }
  0x6f   :  { %461 = vst [vmem:[#allocation11 + $0x48] sm:$0xff] %v429_v24  ;;  %v431_v33 = vadd.f32 %v399_v27, %v335_v26  ;;  %v369_v34 = vld [vmem:[#allocation5 + $0x68] sm:$0xff]  ;;  %v370_v36 = vld [vmem:[#allocation5 + $0x70] sm:$0xff]  ;;  %v338_v39 = vmul.f32 0.999, %v306_v35  ;;  %v307_v41 = vld [vmem:[#allocation8 + $0x78] sm:$0xff] }
  0x70   :  { %462 = vst [vmem:[#allocation11 + $0x50] sm:$0xff] %v430_v25  ;;  %v432_v37 = vadd.f32 %v400_v31, %v336_v30  ;;  %v401_v38 = vmul.f32 0.001, %v369_v34  ;;  %v402_v40 = vmul.f32 0.001, %v370_v36  ;;  %v371_v42 = vld [vmem:[#allocation5 + $0x78] sm:$0xff] }
  0x71   :  { %463 = vst [vmem:[#allocation11 + $0x58] sm:$0xff] %v431_v33  ;;  %v308_v43 = vld [vmem:[#allocation8 + $0x80] sm:$0xff]  ;;  %v339_v46 = vmul.f32 0.999, %v307_v41  ;;  %v403_v47 = vmul.f32 0.001, %v371_v42 }
  0x72   :  { %464 = vst [vmem:[#allocation11 + $0x60] sm:$0xff] %v432_v37  ;;  %v433_v44 = vadd.f32 %v401_v38, %v337_v32  ;;  %v434_v45 = vadd.f32 %v402_v40, %v338_v39  ;;  %v372_v48 = vld [vmem:[#allocation5 + $0x80] sm:$0xff]  ;;  %v309_v49 = vld [vmem:[#allocation8 + $0x88] sm:$0xff]  ;;  %v340_v50 = vmul.f32 0.999, %v308_v43  ;;  %v310_v55 = vld [vmem:[#allocation8 + $0x90] sm:$0xff] }
  0x73   :  { %v404_v51 = vmul.f32 0.001, %v372_v48  ;;  %v341_v52 = vmul.f32 0.999, %v309_v49  ;;  %v435_v53 = vadd.f32 %v403_v47, %v339_v46  ;;  %v373_v54 = vld [vmem:[#allocation5 + $0x88] sm:$0xff]  ;;  %v374_v56 = vld [vmem:[#allocation5 + $0x90] sm:$0xff] }
  0x74   :  { %465 = vst [vmem:[#allocation11 + $0x68] sm:$0xff] %v433_v44  ;;  %466 = vst [vmem:[#allocation11 + $0x70] sm:$0xff] %v434_v45  ;;  %v405_v58 = vmul.f32 0.001, %v373_v54  ;;  %v342_v59 = vmul.f32 0.999, %v310_v55 }
  0x75   :  { %v436_v57 = vadd.f32 %v404_v51, %v340_v50  ;;  %v406_v60 = vmul.f32 0.001, %v374_v56  ;;  %467 = vst [vmem:[#allocation11 + $0x78] sm:$0xff] %v435_v53  ;;  %v311_v61 = vld [vmem:[#allocation8 + $0x98] sm:$0xff]  ;;  %v312_v63 = vld [vmem:[#allocation8 + $0xa0] sm:$0xff]  ;;  %v313_v5 = vld [vmem:[#allocation8 + $0xa8] sm:$0xff]  ;;  %v287_v53 = vlaneseq }
  0x76   :  { %v375_v62 = vld [vmem:[#allocation5 + $0x98] sm:$0xff]  ;;  %v437_v0 = vadd.f32 %v405_v58, %v341_v52  ;;  %v343_v2 = vmul.f32 0.999, %v311_v61  ;;  %v376_v4 = vld [vmem:[#allocation5 + $0xa0] sm:$0xff]  ;;  %v344_v6 = vmul.f32 0.999, %v312_v63 }
  0x77   :  { %468 = vst [vmem:[#allocation11 + $0x80] sm:$0xff] %v436_v57  ;;  %v438_v1 = vadd.f32 %v406_v60, %v342_v59  ;;  %v407_v3 = vmul.f32 0.001, %v375_v62  ;;  %v408_v7 = vmul.f32 0.001, %v376_v4  ;;  %v377_v10 = vld [vmem:[#allocation5 + $0xa8] sm:$0xff] }
  0x78   :  { %v345_v8 = vmul.f32 0.999, %v313_v5  ;;  %469 = vst [vmem:[#allocation11 + $0x88] sm:$0xff] %v437_v0  ;;  %v314_v11 = vld [vmem:[#allocation8 + $0xb0] sm:$0xff]  ;;  %v409_v14 = vmul.f32 0.001, %v377_v10 }
  0x79   :  { %470 = vst [vmem:[#allocation11 + $0x90] sm:$0xff] %v438_v1  ;;  %v439_v9 = vadd.f32 %v407_v3, %v343_v2  ;;  %v378_v12 = vld [vmem:[#allocation5 + $0xb0] sm:$0xff]  ;;  %v440_v13 = vadd.f32 %v408_v7, %v344_v6  ;;  %v346_v15 = vmul.f32 0.999, %v314_v11  ;;  %v315_v17 = vld [vmem:[#allocation8 + $0xb8] sm:$0xff]  ;;  %v316_v19 = vld [vmem:[#allocation8 + $0xc0] sm:$0xff] }
  0x7a   :  { %v410_v16 = vmul.f32 0.001, %v378_v12  ;;  %v379_v18 = vld [vmem:[#allocation5 + $0xb8] sm:$0xff]  ;;  %v441_v20 = vadd.f32 %v409_v14, %v345_v8  ;;  %v347_v22 = vmul.f32 0.999, %v315_v17  ;;  %v380_v24 = vld [vmem:[#allocation5 + $0xc0] sm:$0xff] }
  0x7b   :  { %471 = vst [vmem:[#allocation11 + $0x98] sm:$0xff] %v439_v9  ;;  %472 = vst [vmem:[#allocation11 + $0xa0] sm:$0xff] %v440_v13  ;;  %v411_v23 = vmul.f32 0.001, %v379_v18  ;;  %v317_v25 = vld [vmem:[#allocation8 + $0xc8] sm:$0xff]  ;;  %v318_v31 = vld [vmem:[#allocation8 + $0xd0] sm:$0xff] }
  0x7c   :  { %v442_v21 = vadd.f32 %v410_v16, %v346_v15  ;;  %v348_v26 = vmul.f32 0.999, %v316_v19  ;;  %v412_v27 = vmul.f32 0.001, %v380_v24  ;;  %v349_v28 = vmul.f32 0.999, %v317_v25 }
  0x7d   :  { %473 = vst [vmem:[#allocation11 + $0xa8] sm:$0xff] %v441_v20  ;;  %v443_v29 = vadd.f32 %v411_v23, %v347_v22  ;;  %v381_v30 = vld [vmem:[#allocation5 + $0xc8] sm:$0xff]  ;;  %v382_v32 = vld [vmem:[#allocation5 + $0xd0] sm:$0xff]  ;;  %v350_v35 = vmul.f32 0.999, %v318_v31  ;;  %v319_v37 = vld [vmem:[#allocation8 + $0xd8] sm:$0xff] }
  0x7e   :  { %474 = vst [vmem:[#allocation11 + $0xb0] sm:$0xff] %v442_v21  ;;  %v444_v33 = vadd.f32 %v412_v27, %v348_v26  ;;  %v413_v34 = vmul.f32 0.001, %v381_v30  ;;  %v414_v36 = vmul.f32 0.001, %v382_v32  ;;  %v383_v38 = vld [vmem:[#allocation5 + $0xd8] sm:$0xff] }
  0x7f   :  { %475 = vst [vmem:[#allocation11 + $0xb8] sm:$0xff] %v443_v29  ;;  %v320_v39 = vld [vmem:[#allocation8 + $0xe0] sm:$0xff]  ;;  %v351_v42 = vmul.f32 0.999, %v319_v37  ;;  %v415_v43 = vmul.f32 0.001, %v383_v38 }
  0x80   :  { %476 = vst [vmem:[#allocation11 + $0xc0] sm:$0xff] %v444_v33  ;;  %v445_v40 = vadd.f32 %v413_v34, %v349_v28  ;;  %v446_v41 = vadd.f32 %v414_v36, %v350_v35  ;;  %v384_v44 = vld [vmem:[#allocation5 + $0xe0] sm:$0xff]  ;;  %v321_v45 = vld [vmem:[#allocation8 + $0xe8] sm:$0xff]  ;;  %v352_v46 = vmul.f32 0.999, %v320_v39  ;;  %v322_v51 = vld [vmem:[#allocation8 + $0xf0] sm:$0xff] }
  0x81   :  { %v416_v47 = vmul.f32 0.001, %v384_v44  ;;  %v353_v48 = vmul.f32 0.999, %v321_v45  ;;  %v447_v49 = vadd.f32 %v415_v43, %v351_v42  ;;  %v385_v50 = vld [vmem:[#allocation5 + $0xe8] sm:$0xff]  ;;  %v386_v52 = vld [vmem:[#allocation5 + $0xf0] sm:$0xff] }
  0x82   :  { %477 = vst [vmem:[#allocation11 + $0xc8] sm:$0xff] %v445_v40  ;;  %478 = vst [vmem:[#allocation11 + $0xd0] sm:$0xff] %v446_v41  ;;  %v417_v55 = vmul.f32 0.001, %v385_v50  ;;  %v354_v56 = vmul.f32 0.999, %v322_v51 }
  0x83   :  { %v448_v54 = vadd.f32 %v416_v47, %v352_v46  ;;  %v418_v57 = vmul.f32 0.001, %v386_v52  ;;  %479 = vst [vmem:[#allocation11 + $0xd8] sm:$0xff] %v447_v49  ;;  %v323_v58 = vld [vmem:[#allocation8 + $0xf8] sm:$0xff]  ;;  %v282_v60 = vld [vmem:[%s802_s5] sm:$0x3] }
  0x84   :  { %v387_v59 = vld [vmem:[#allocation5 + $0xf8] sm:$0xff]  ;;  %s682_s26 = smov [#allocation11]   ;;  %v449_v61 = vadd.f32 %v417_v55, %v353_v48  ;;  %v355_v63 = vmul.f32 0.999, %v323_v58  ;;  %v284_v1 = vld [vmem:[%s798_s1] sm:$0x3] }
  0x85   :  { %s509_s27 = sshll.u32 %s682_s26, 4  ;;  %480 = vst [vmem:[#allocation11 + $0xe0] sm:$0xff] %v448_v54  ;;  %v450_v62 = vadd.f32 %v418_v57, %v354_v56  ;;  %v419_v0 = vmul.f32 0.001, %v387_v59  ;;  %v283_v2 = vmul.f32 0.999, %v282_v60  ;;  %s510_s27 = int_to_ptr.vmem [resolvable:$true] %s509_s27 }
  0x86   :  { %v285_v3 = vmul.f32 0.001, %v284_v1  ;;  %v484_v4 = vld [vmem:[%s804_s7] sm:$0x1]  ;;  %481 = vst [vmem:[#allocation11 + $0xe8] sm:$0xff] %v449_v61  ;;  %vm289_vm0 = vcmp.lt.s32.totalorder %v287_v53, 256  ;;  %p648_p12 = scmp.lt.s32.totalorder %s510_s27, %s510_s27 }
  0x87   :  { %482 = vst [vmem:[#allocation11 + $0xf0] sm:$0xff] %v450_v62  ;;  %v451_v5 = vadd.f32 %v419_v0, %v355_v63  ;;  %v485_v6 = vmul.f32 0.999, %v484_v4  ;;  %v486_v7 = vld [vmem:[%s800_s3] sm:$0x1]  ;;  %s643_s14 = scalar_lea.vmem %s510_s27, 4096 }
  0x88   :  { %v286_v8 = vadd.f32 %v285_v3, %v283_v2  ;;  %v487_v9 = vmul.f32 0.001, %v486_v7  ;;  %p644_p11 = scmp.ne.s32.totalorder %s510_s27, %s643_s14  ;;  %p649_p13 = scmp.lt.s32.totalorder %s643_s14, %s643_s14 }
  0x89   :  { %483 = vst [vmem:[#allocation11 + $0xf8] sm:$0xff] %v451_v5 }
  0x8a   :  { %291 = vst.msk [vmem:[%s806_s9] sm:$0x3] %vm289_vm0, %v286_v8  ;;  %v488_v10 = vadd.f32 %v487_v9, %v485_v6  ;;  %p650_p0 = por %p649_p13, %p648_p12 }
  0x8c   :  { %p651_p1 = pnand %p650_p0, %p644_p11 }
  0x8e   :  { %654 = shalt.err (!%p651_p1)
}
  0x8f   :  { %515 = dma.vmem_to_hbm [thread:$0]  %s510_s27, 4096, %s807_s10, [#allocation12], %s674_s20, %s674_s20, %s675_s21  }
  0x90   :  { %489 = vst [vmem:[%s808_s11] sm:$0x1] %v488_v10 }
  0x91   :  { %669 = dma.done.wait [#allocation4], 4096  }
  0x92   :  { %670 = vsyncadd [#allocation4], 4294963200 }
  0x93   :  { %671 = dma.done.wait [#allocation12], 4096  }
  0x94   :  { %672 = vsyncadd [#allocation12], 4294963200 }
  0x95   :  { %528 = vsyncpa [#allocation3], 1 }
  0x96   :  { %529 = vsyncpa [#allocation6], 1 }
  0x97   :  { %530 = vsyncpa [#allocation9], 1 }
  0x98   :  { %531 = vsyncpa [#allocation4], 1 }
  0x99   :  { %532 = vsyncpa [#allocation12], 1 }

</bundles_post_ra>
